<compile_context>
chip_gen: v6e
topology: v6e:2x2x1
jax: 0.10.0
libtpu: 0.0.40
codegen_flags: <defaults>
</compile_context>

<pallas_src>
import functools

import jax
import jax.numpy as jnp
from jax.experimental import pallas as pl
from jax.experimental.pallas import tpu as pltpu

KH = KW = 3  # fixed 3x3 kernel, stride 1, padding 1 (ConvReLU defaults)


def _conv_relu_kernel(x_ref, w_ref, b_ref, o_ref, *, rows, out_w, compute_dtype):
    # x_ref: (1, 1, rows+2, W+2, C_in)  one padded halo row-strip
    # w_ref: (KH, KW*C_in, TC)          kw-folded weights for one C_out tile
    # b_ref: (1, TC)                    bias tile (f32)
    # o_ref: (1, 1, rows, W, TC)        output tile
    c_in = x_ref.shape[-1]
    tc = o_ref.shape[-1]
    w = out_w

    acc = jnp.zeros((rows * w, tc), dtype=jnp.float32)
    for kh in range(KH):
        slab = x_ref[0, 0, kh:kh + rows, :, :].astype(compute_dtype)  # (rows, W+2, C_in)
        # Fold the 3 kw taps into the contraction dim -> (rows*W, 3*C_in).
        patch = jnp.concatenate(
            [slab[:, kw:kw + w, :] for kw in range(KW)], axis=-1
        ).reshape(rows * w, KW * c_in)
        acc += jnp.dot(patch, w_ref[kh],
                       preferred_element_type=jnp.float32)          # MXU, K=3*C_in

    acc += b_ref[...].astype(jnp.float32)                           # bias
    acc = jnp.maximum(acc, 0.0)                                     # ReLU
    o_ref[0, 0] = acc.reshape(rows, w, tc).astype(o_ref.dtype)


def _pick_row_block(h, w, c_in, tc, budget_bytes=2 * 1024 * 1024):
    """Largest multiple-of-8 row block whose input strip / output tile fit ~2MB."""
    r = 8
    while True:
        nr = r + 8
        in_bytes = (nr + 2) * (w + 2) * c_in * 4
        out_bytes = nr * w * tc * 4
        if nr > max(8, h) or nr > 256 or in_bytes > budget_bytes or out_bytes > budget_bytes:
            return r
        r = nr


@functools.partial(jax.jit, static_argnames=("row_block", "use_bf16_compute"))
def conv_relu(x_nchw, weight, bias, *, row_block=None, use_bf16_compute=True):
    """x_nchw: (N, C_in, H, W); weight: (C_out, C_in, 3, 3); bias: (C_out,)."""
    n, c_in, h, w = x_nchw.shape
    c_out = weight.shape[0]
    compute_dtype = jnp.bfloat16 if use_bf16_compute else x_nchw.dtype

    # C_out tile: 128 keeps output stores lane-dense and fits every MXU gen.
    tc = 128 if c_out % 128 == 0 else c_out
    cb = c_out // tc

    if row_block is None:
        r = _pick_row_block(h, w, c_in, tc)
    else:
        r = max(8, -(-int(row_block) // 8) * 8)
    rb = -(-h // r)
    hp = rb * r

    # Glue: NCHW -> NHWC, zero-pad (padding=1, plus pad H up to a multiple of
    # the row block), and lay out overlapping (r+2)-row halo strips so the
    # kernel needs only plain Blocked BlockSpecs with full auto-pipelining.
    x_nhwc = jnp.transpose(x_nchw, (0, 2, 3, 1))
    x_pad = jnp.pad(x_nhwc, ((0, 0), (1, 1 + hp - h), (1, 1), (0, 0)))
    x_strips = jnp.stack([x_pad[:, i * r:i * r + r + 2] for i in range(rb)],
                         axis=1)                  # (N, rb, r+2, W+2, C_in)

    # Weight (C_out, C_in, KH, KW) -> (KH, KW*C_in, C_out); K is kw-major.
    w_folded = jnp.transpose(weight, (2, 3, 1, 0)).reshape(KH, KW * c_in, c_out)
    w_folded = w_folded.astype(compute_dtype)
    b2 = bias.reshape(1, c_out).astype(jnp.float32)

    kernel = functools.partial(_conv_relu_kernel, rows=r, out_w=w,
                               compute_dtype=compute_dtype)

    flops = 2 * n * hp * w * c_in * c_out * KH * KW
    bytes_accessed = (x_strips.size * x_strips.dtype.itemsize
                      + w_folded.size * w_folded.dtype.itemsize
                      + b2.size * 4
                      + n * hp * w * c_out * x_nchw.dtype.itemsize)

    out = pl.pallas_call(
        kernel,
        out_shape=jax.ShapeDtypeStruct((n, rb, r, w, c_out), x_nchw.dtype),
        grid_spec=pltpu.PrefetchScalarGridSpec(
            num_scalar_prefetch=0,
            grid=(n, rb, cb),
            in_specs=[
                pl.BlockSpec((1, 1, r + 2, w + 2, c_in),
                             lambda ni, ri, ci: (ni, ri, 0, 0, 0)),
                pl.BlockSpec((KH, KW * c_in, tc),
                             lambda ni, ri, ci: (0, 0, ci)),
                pl.BlockSpec((1, tc),
                             lambda ni, ri, ci: (0, ci)),
            ],
            out_specs=pl.BlockSpec((1, 1, r, w, tc),
                                   lambda ni, ri, ci: (ni, ri, 0, 0, ci)),
        ),
        compiler_params=pltpu.CompilerParams(
            dimension_semantics=("parallel", "parallel", "parallel"),
            vmem_limit_bytes=32 * 1024 * 1024,
        ),
        cost_estimate=pl.CostEstimate(
            flops=flops, transcendentals=0, bytes_accessed=bytes_accessed),
    )(x_strips, w_folded, b2)

    # Drop the H padding, restore NCHW to match the PyTorch convention.
    out = out.reshape(n, rb * r, w, c_out)[:, :h]
    return jnp.transpose(out, (0, 3, 1, 2))


def _reference(x_nchw, weight, bias):
    out = jax.lax.conv_general_dilated(
        x_nchw, weight, window_strides=(1, 1), padding=((1, 1), (1, 1)),
        dimension_numbers=("NCHW", "OIHW", "NCHW"),
        precision=jax.lax.Precision.HIGHEST)
    out = out + bias.reshape(1, -1, 1, 1)
    return jnp.maximum(out, 0.0)


if __name__ == "__main__":
    key = jax.random.PRNGKey(0)
    k_x, k_w, k_b = jax.random.split(key, 3)

    # Small VGG16-flavoured ConvReLU layer: exercises multiple row blocks and
    # multiple C_out tiles (grid = (2, 2, 2)).
    n, c_in, h, w = 2, 64, 16, 16
    c_out = 256

    x = jax.random.normal(k_x, (n, c_in, h, w), dtype=jnp.float32)
    # Deterministic Kaiming-uniform-like init (shapes from nn.Conv2d).
    fan_in = c_in * KH * KW
    bound = 1.0 / (fan_in ** 0.5)
    weight = jax.random.uniform(k_w, (c_out, c_in, KH, KW),
                                minval=-bound, maxval=bound, dtype=jnp.float32)
    bias = jax.random.uniform(k_b, (c_out,),
                              minval=-bound, maxval=bound, dtype=jnp.float32)

    out = conv_relu(x, weight, bias, row_block=8)
    out = jax.block_until_ready(out)

    ref = _reference(x, weight, bias)
    assert out.shape == (n, c_out, h, w)
    # bf16 MXU operands (f32 accumulation) -> loosened tolerance vs f32 ref.
    assert jnp.allclose(out, ref, atol=3e-2, rtol=3e-2), \
        float(jnp.max(jnp.abs(out - ref)))

    print("KERNEL_OK")
</pallas_src>

<mosaic_0001>
module attributes {stable_mosaic.version = 11 : i64} {
  func.func @_conv_relu_kernel(%arg0: i32, %arg1: i32, %arg2: i32, %arg3: memref<1x1x10x18x64xf32, #tpu.memory_space<vmem>>, %arg4: memref<3x192x128xbf16, #tpu.memory_space<vmem>>, %arg5: memref<1x128xf32, #tpu.memory_space<vmem>>, %arg6: memref<1x1x8x16x128xf32, #tpu.memory_space<vmem>>) attributes {dimension_semantics = [#tpu.dimension_semantics<parallel>, #tpu.dimension_semantics<parallel>, #tpu.dimension_semantics<parallel>], iteration_bounds = array<i64: 2, 2, 2>, scalar_prefetch = 0 : i64, scratch_operands = 0 : i64, tpu.core_type = #tpu.core_type<tc>, window_params = [{transform_indices = @transform_0, window_bounds = array<i64: 1, 1, 10, 18, 64>}, {transform_indices = @transform_1, window_bounds = array<i64: 3, 192, 128>}, {transform_indices = @transform_2, window_bounds = array<i64: 1, 128>}, {transform_indices = @transform_3, window_bounds = array<i64: 1, 1, 8, 16, 128>}]} {
    %cst = arith.constant 0.000000e+00 : f32
    %0 = vector.broadcast %cst : f32 to vector<128x128xf32>
    %c0 = arith.constant 0 : index
    %c0_0 = arith.constant 0 : index
    %c0_1 = arith.constant 0 : index
    %c0_2 = arith.constant 0 : index
    %c0_3 = arith.constant 0 : index
    %1 = vector.load %arg3[%c0, %c0_0, %c0_1, %c0_2, %c0_3] : memref<1x1x10x18x64xf32, #tpu.memory_space<vmem>>, vector<1x1x8x18x64xf32>
    %2 = vector.shape_cast %1 : vector<1x1x8x18x64xf32> to vector<8x18x64xf32>
    %3 = arith.truncf %2 : vector<8x18x64xf32> to vector<8x18x64xbf16>
    %4 = vector.extract_strided_slice %3 {offsets = [0, 0, 0], sizes = [8, 16, 64], strides = [1, 1, 1]} : vector<8x18x64xbf16> to vector<8x16x64xbf16>
    %5 = vector.extract_strided_slice %3 {offsets = [0, 1, 0], sizes = [8, 16, 64], strides = [1, 1, 1]} : vector<8x18x64xbf16> to vector<8x16x64xbf16>
    %6 = vector.extract_strided_slice %3 {offsets = [0, 2, 0], sizes = [8, 16, 64], strides = [1, 1, 1]} : vector<8x18x64xbf16> to vector<8x16x64xbf16>
    %7 = tpu.concatenate %4, %5, %6 in 2 : vector<8x16x64xbf16>, vector<8x16x64xbf16>, vector<8x16x64xbf16> -> vector<8x16x192xbf16>
    %8 = vector.shape_cast %7 : vector<8x16x192xbf16> to vector<128x192xbf16>
    %c0_4 = arith.constant 0 : index
    %c0_5 = arith.constant 0 : index
    %c0_6 = arith.constant 0 : index
    %9 = vector.load %arg4[%c0_4, %c0_5, %c0_6] : memref<3x192x128xbf16, #tpu.memory_space<vmem>>, vector<1x192x128xbf16>
    %10 = vector.shape_cast %9 : vector<1x192x128xbf16> to vector<192x128xbf16>
    %cst_7 = arith.constant dense<0.000000e+00> : vector<128x128xf32>
    %11 = tpu.matmul %8, %10, %cst_7 {dimension_numbers = #tpu.dot_dimension_numbers<[1], [0], [0], [1], [0, 0, 1, 1], [], []>} : vector<128x192xbf16>, vector<192x128xbf16>, vector<128x128xf32> -> vector<128x128xf32>
    %12 = arith.addf %0, %11 : vector<128x128xf32>
    %c0_8 = arith.constant 0 : index
    %c0_9 = arith.constant 0 : index
    %c1 = arith.constant 1 : index
    %c0_10 = arith.constant 0 : index
    %c0_11 = arith.constant 0 : index
    %13 = vector.load %arg3[%c0_8, %c0_9, %c1, %c0_10, %c0_11] : memref<1x1x10x18x64xf32, #tpu.memory_space<vmem>>, vector<1x1x8x18x64xf32>
    %14 = vector.shape_cast %13 : vector<1x1x8x18x64xf32> to vector<8x18x64xf32>
    %15 = arith.truncf %14 : vector<8x18x64xf32> to vector<8x18x64xbf16>
    %16 = vector.extract_strided_slice %15 {offsets = [0, 0, 0], sizes = [8, 16, 64], strides = [1, 1, 1]} : vector<8x18x64xbf16> to vector<8x16x64xbf16>
    %17 = vector.extract_strided_slice %15 {offsets = [0, 1, 0], sizes = [8, 16, 64], strides = [1, 1, 1]} : vector<8x18x64xbf16> to vector<8x16x64xbf16>
    %18 = vector.extract_strided_slice %15 {offsets = [0, 2, 0], sizes = [8, 16, 64], strides = [1, 1, 1]} : vector<8x18x64xbf16> to vector<8x16x64xbf16>
    %19 = tpu.concatenate %16, %17, %18 in 2 : vector<8x16x64xbf16>, vector<8x16x64xbf16>, vector<8x16x64xbf16> -> vector<8x16x192xbf16>
    %20 = vector.shape_cast %19 : vector<8x16x192xbf16> to vector<128x192xbf16>
    %c1_12 = arith.constant 1 : index
    %c0_13 = arith.constant 0 : index
    %c0_14 = arith.constant 0 : index
    %21 = vector.load %arg4[%c1_12, %c0_13, %c0_14] : memref<3x192x128xbf16, #tpu.memory_space<vmem>>, vector<1x192x128xbf16>
    %22 = vector.shape_cast %21 : vector<1x192x128xbf16> to vector<192x128xbf16>
    %cst_15 = arith.constant dense<0.000000e+00> : vector<128x128xf32>
    %23 = tpu.matmul %20, %22, %cst_15 {dimension_numbers = #tpu.dot_dimension_numbers<[1], [0], [0], [1], [0, 0, 1, 1], [], []>} : vector<128x192xbf16>, vector<192x128xbf16>, vector<128x128xf32> -> vector<128x128xf32>
    %24 = arith.addf %12, %23 : vector<128x128xf32>
    %c0_16 = arith.constant 0 : index
    %c0_17 = arith.constant 0 : index
    %c2 = arith.constant 2 : index
    %c0_18 = arith.constant 0 : index
    %c0_19 = arith.constant 0 : index
    %25 = vector.load %arg3[%c0_16, %c0_17, %c2, %c0_18, %c0_19] : memref<1x1x10x18x64xf32, #tpu.memory_space<vmem>>, vector<1x1x8x18x64xf32>
    %26 = vector.shape_cast %25 : vector<1x1x8x18x64xf32> to vector<8x18x64xf32>
    %27 = arith.truncf %26 : vector<8x18x64xf32> to vector<8x18x64xbf16>
    %28 = vector.extract_strided_slice %27 {offsets = [0, 0, 0], sizes = [8, 16, 64], strides = [1, 1, 1]} : vector<8x18x64xbf16> to vector<8x16x64xbf16>
    %29 = vector.extract_strided_slice %27 {offsets = [0, 1, 0], sizes = [8, 16, 64], strides = [1, 1, 1]} : vector<8x18x64xbf16> to vector<8x16x64xbf16>
    %30 = vector.extract_strided_slice %27 {offsets = [0, 2, 0], sizes = [8, 16, 64], strides = [1, 1, 1]} : vector<8x18x64xbf16> to vector<8x16x64xbf16>
    %31 = tpu.concatenate %28, %29, %30 in 2 : vector<8x16x64xbf16>, vector<8x16x64xbf16>, vector<8x16x64xbf16> -> vector<8x16x192xbf16>
    %32 = vector.shape_cast %31 : vector<8x16x192xbf16> to vector<128x192xbf16>
    %c2_20 = arith.constant 2 : index
    %c0_21 = arith.constant 0 : index
    %c0_22 = arith.constant 0 : index
    %33 = vector.load %arg4[%c2_20, %c0_21, %c0_22] : memref<3x192x128xbf16, #tpu.memory_space<vmem>>, vector<1x192x128xbf16>
    %34 = vector.shape_cast %33 : vector<1x192x128xbf16> to vector<192x128xbf16>
    %cst_23 = arith.constant dense<0.000000e+00> : vector<128x128xf32>
    %35 = tpu.matmul %32, %34, %cst_23 {dimension_numbers = #tpu.dot_dimension_numbers<[1], [0], [0], [1], [0, 0, 1, 1], [], []>} : vector<128x192xbf16>, vector<192x128xbf16>, vector<128x128xf32> -> vector<128x128xf32>
    %36 = arith.addf %24, %35 : vector<128x128xf32>
    %c0_24 = arith.constant 0 : index
    %c0_25 = arith.constant 0 : index
    %37 = vector.load %arg5[%c0_24, %c0_25] : memref<1x128xf32, #tpu.memory_space<vmem>>, vector<1x128xf32>
    %38 = vector.broadcast %37 : vector<1x128xf32> to vector<128x128xf32>
    %39 = arith.addf %36, %38 : vector<128x128xf32>
    %cst_26 = arith.constant 0.000000e+00 : f32
    %40 = vector.broadcast %cst_26 : f32 to vector<128x128xf32>
    %41 = arith.maximumf %39, %40 : vector<128x128xf32>
    %42 = vector.shape_cast %41 : vector<128x128xf32> to vector<8x16x128xf32>
    %c0_27 = arith.constant 0 : index
    %c0_28 = arith.constant 0 : index
    %c0_29 = arith.constant 0 : index
    %c0_30 = arith.constant 0 : index
    %c0_31 = arith.constant 0 : index
    %43 = vector.load %arg6[%c0_27, %c0_28, %c0_29, %c0_30, %c0_31] : memref<1x1x8x16x128xf32, #tpu.memory_space<vmem>>, vector<1x1x8x16x128xf32>
    %44 = vector.shape_cast %43 : vector<1x1x8x16x128xf32> to vector<8x16x128xf32>
    %45 = vector.shape_cast %42 : vector<8x16x128xf32> to vector<1x1x8x16x128xf32>
    tpu.vector_store %arg6[%c0_27, %c0_28, %c0_29, %c0_30, %c0_31], %45 {strides = array<i32>} : memref<1x1x8x16x128xf32, #tpu.memory_space<vmem>>, vector<1x1x8x16x128xf32>,
    return
  }
  func.func @transform_0(%arg0: i32, %arg1: i32, %arg2: i32) -> (i32, i32, i32, i32, i32) {
    %c0_i32 = arith.constant 0 : i32
    %c0_i32_0 = arith.constant 0 : i32
    %c0_i32_1 = arith.constant 0 : i32
    %c0_i32_2 = arith.constant 0 : i32
    return %arg0, %arg1, %c0_i32, %c0_i32_0, %c0_i32_1 : i32, i32, i32, i32, i32
  }
  func.func @transform_1(%arg0: i32, %arg1: i32, %arg2: i32) -> (i32, i32, i32) {
    %c0_i32 = arith.constant 0 : i32
    %c0_i32_0 = arith.constant 0 : i32
    %c0_i32_1 = arith.constant 0 : i32
    return %c0_i32, %c0_i32_0, %arg2 : i32, i32, i32
  }
  func.func @transform_2(%arg0: i32, %arg1: i32, %arg2: i32) -> (i32, i32) {
    %c0_i32 = arith.constant 0 : i32
    %c0_i32_0 = arith.constant 0 : i32
    return %c0_i32, %arg2 : i32, i32
  }
  func.func @transform_3(%arg0: i32, %arg1: i32, %arg2: i32) -> (i32, i32, i32, i32, i32) {
    %c0_i32 = arith.constant 0 : i32
    %c0_i32_0 = arith.constant 0 : i32
    %c0_i32_1 = arith.constant 0 : i32
    return %arg0, %arg1, %c0_i32, %c0_i32_0, %arg2 : i32, i32, i32, i32, i32
  }
}

</mosaic_0001>

<bundles_post_ra>
// kernel: conv_relu.1
= control target key start
LH: loop header
LB: loop body
LE: loop exit
PB: predicated region body
PF: predicated region fallthrough
CT: control target
= control target key end

     0   :  { %s3572_s0 = inlined_call_operand.vmem [shape: f32[2,2,10,18,64], index: 0, kind: input, shape index: {}]   ;;  %s3573_s1 = inlined_call_operand.vmem [shape: bf16[3,192,256], index: 1, kind: input, shape index: {}]   ;;  %s3574_s2 = inlined_call_operand.vmem [shape: f32[1,256], index: 2, kind: input, shape index: {}]   ;;  %s3575_s3 = inlined_call_operand.hbm [shape: f32[2,2,8,16,256], index: 3, kind: output, shape index: {}]  }
   0x1   :  { %3578 = sst [smem:[#allocation8_spill]] %s3573_s1 }
   0x2   :  { %8 = vsyncpa [#allocation4], 0 }
   0x3   :  { %10 = vsyncpa [#allocation4 + $0x1], 0  ;;  %s2576_s12 = smov 0   ;;  %s2578_s13 = smov 0  }
   0x4   :  { %s2580_s14 = smov 0   ;;  %s2582_s15 = smov 0  }
   0x5   :  { %s2584_s16 = smov 0   ;;  %s2586_s17 = smov 0  }
   0x6   :  { %s2588_s18 = smov 0   ;;  %s2590_s19 = smov 0  }
   0x7   :  { %s2592_s20 = smov 0   ;;  %s2594_s21 = smov 0  }
   0x8   :  { %s2596_s22 = smov 0   ;;  %s2598_s23 = smov 0  }
   0x9 LB: > { %s2081_s24 = sadd.s32 4294967295, %s2548_s23   ;;  %s2082_s25 = sadd.s32 4294967294, %s2548_s23   ;;  %s2548_s23 = sphi %s2598_s23, %s16_s23   ;;  %s2544_s22 = sphi %s2596_s22, %s3597_s22   ;;  %s2540_s21 = sphi %s2594_s21, %s3596_s21   ;;  %s2536_s20 = sphi %s2592_s20, %s3595_s20   ;;  %s2532_s19 = sphi %s2590_s19, %s3594_s19   ;;  %s2528_s18 = sphi %s2588_s18, %s3593_s18   ;;  %s2524_s17 = sphi %s2586_s17, %s3592_s17   ;;  %s2520_s16 = sphi %s2584_s16, %s3591_s16   ;;  %s2516_s15 = sphi %s2582_s15, %s3590_s15   ;;  %s2512_s14 = sphi %s2580_s14, %s3589_s14   ;;  %s2508_s13 = sphi %s2578_s13, %s3588_s13   ;;  %s2504_s12 = sphi %s2576_s12, %s3587_s12  }
   0xa   : > { %s28_s26 = sadd.s32 1, %s2536_s20  ;;  %s31_s27 = sadd.s32 1, %s2540_s21 }
   0xb   : > { %p29_p0 = scmp.ge.s32.totalorder %s28_s26, 2  ;;  %s35_s28 = sadd.s32 1, %s2544_s22 }
   0xc   : > { %p77_p1 = scmp.ne.s32.totalorder %s2520_s16, %s2516_s15  ;;  %p78_p2 = scmp.eq.s32.totalorder %s2548_s23, 0 }
   0xd   : > { %s3599_s26 = smov (%p29_p0, %s28_s26), 0  ;;  %s3601_s27 = smov (!%p29_p0, %s31_s27), %s2540_s21 }
   0xe   : > { %s67_s29 = ssub.s32 %s2536_s20, %s3599_s26  ;;  %p33_p3 = scmp.ge.s32.totalorder %s3601_s27, 2 }
   0xf   : > { %p68_p4 = scmp.eq.s32.totalorder %s67_s29, 0  ;;  %s70_s30 = sadd.s32 1, %s2520_s16 }
  0x10   : > { %p2650_p5 = por %p78_p2, %p77_p1  ;;  %s3603_s27 = smov (%p33_p3, %s3601_s27), 0 }
  0x11   : > { %3580 = sst [smem:[#allocation6_spill]] %s3603_s27  ;;  %s3605_s28 = smov (!%p33_p3, %s35_s28), %s2544_s22 }
  0x12   : > { %s2658_s5 = scalar_select %p68_p4, %s2520_s16, %s70_s30  }
  0x13   : > { %p37_p6 = scmp.ge.s32.totalorder %s3605_s28, 2  ;;  %s120_s6 = ssub.s32 %s2540_s21, %s3603_s27 }
  0x14   : > { %p136_p7 = scmp.ne.s32.totalorder %s2512_s14, %s2508_s13  ;;  %p137_p8 = scmp.eq.s32.totalorder %s2081_s24, 7 }
  0x15   : > { %s3607_s28 = smov (%p37_p6, %s3605_s28), 0  ;;  %p142_p10 = scmp.ne.s32.totalorder %s2508_s13, %s2504_s12 }
  0x16   : > { %3581 = sst [smem:[#allocation7_spill]] %s3607_s28  ;;  %p2666_p9 = por %p137_p8, %p136_p7 }
  0x17   : > { %s119_s8 = ssub.s32 %s2544_s22, %s3607_s28  ;;  %p143_p11 = scmp.eq.s32.totalorder %s2082_s25, 7 }
  0x18   : > { %s121_s9 = sor.u32 %s120_s6, %s119_s8  ;;  %s126_s10 = sadd.s32 1, %s2512_s14 }
  0x19   : > { %s123_s11 = sor.u32 %s121_s9, %s67_s29  ;;  %p2675_p12 = por %p143_p11, %p142_p10 }
  0x1a   : > { %p124_p13 = scmp.eq.s32.totalorder %s123_s11, 0  ;;  %p2084_p0 = scmp.ge.s32.totalorder %s2548_s23, 8 }
  0x1c   : > { %s2680_s27 = scalar_select %p124_p13, %s2512_s14, %s126_s10  }
  0x1d   : > { %159 = sbr.rel (%p2084_p0) target bundleno = 92 (0x5c), region = 16 }
  0x22   : > { %174 = sbr.rel (!%p2650_p5) target bundleno = 92 (0x5c), region = 24  ;;  %s176_s24 = sand.u32 (%p2650_p5), 1, %s2520_s16  }
  0x23   : > { %s2085_s25 = sshll.u32 (%p2650_p5), %s2536_s20, 2  ;;  %s2276_s6 = smul.u32 (%p2650_p5), 288, %s176_s24 }
  0x24   : > { %s3584_s1 = sld [smem:[#allocation8_spill]] (%p2650_p5) }
  0x25   : > { %s2697_s4 = scalar_lea.vmem (%p2650_p5), [#allocation2], %s2276_s6 }
  0x2a   : > { %s2690_s9 = scalar_lea.vmem %s3584_s1, %s2085_s25 }
  0x2b   : > { %v197_v0 = vld [vmem:[%s2690_s9] sm:$0xf]  ;;  %v199_v1 = vld [vmem:[%s2690_s9 + $0x8] sm:$0xf]  ;;  %v201_v2 = vld [vmem:[%s2690_s9 + $0x10] sm:$0xf] }
  0x2c   : > { %v203_v3 = vld [vmem:[%s2690_s9 + $0x18] sm:$0xf]  ;;  %v205_v4 = vld [vmem:[%s2690_s9 + $0x20] sm:$0xf]  ;;  %198 = vst [vmem:[%s2697_s4] sm:$0xf] %v197_v0 }
  0x2d   : > { %200 = vst [vmem:[%s2697_s4 + $0x4] sm:$0xf] %v199_v1  ;;  %202 = vst [vmem:[%s2697_s4 + $0x8] sm:$0xf] %v201_v2  ;;  %v207_v5 = vld [vmem:[%s2690_s9 + $0x28] sm:$0xf] }
  0x2e   : > { %204 = vst [vmem:[%s2697_s4 + $0xc] sm:$0xf] %v203_v3  ;;  %206 = vst [vmem:[%s2697_s4 + $0x10] sm:$0xf] %v205_v4  ;;  %v209_v6 = vld [vmem:[%s2690_s9 + $0x30] sm:$0xf] }
  0x2f   : > { %v211_v7 = vld [vmem:[%s2690_s9 + $0x38] sm:$0xf]  ;;  %208 = vst [vmem:[%s2697_s4 + $0x14] sm:$0xf] %v207_v5  ;;  %210 = vst [vmem:[%s2697_s4 + $0x18] sm:$0xf] %v209_v6 }
  0x30   : > { %212 = vst [vmem:[%s2697_s4 + $0x1c] sm:$0xf] %v211_v7  ;;  %v213_v8 = vld [vmem:[%s2690_s9 + $0x40] sm:$0xf]  ;;  %v215_v9 = vld [vmem:[%s2690_s9 + $0x48] sm:$0xf] }
  0x31   : > { %v217_v10 = vld [vmem:[%s2690_s9 + $0x50] sm:$0xf]  ;;  %214 = vst [vmem:[%s2697_s4 + $0x20] sm:$0xf] %v213_v8  ;;  %216 = vst [vmem:[%s2697_s4 + $0x24] sm:$0xf] %v215_v9 }
  0x32   : > { %218 = vst [vmem:[%s2697_s4 + $0x28] sm:$0xf] %v217_v10  ;;  %v219_v11 = vld [vmem:[%s2690_s9 + $0x58] sm:$0xf]  ;;  %v221_v12 = vld [vmem:[%s2690_s9 + $0x60] sm:$0xf] }
  0x33   : > { %v223_v13 = vld [vmem:[%s2690_s9 + $0x68] sm:$0xf]  ;;  %220 = vst [vmem:[%s2697_s4 + $0x2c] sm:$0xf] %v219_v11  ;;  %222 = vst [vmem:[%s2697_s4 + $0x30] sm:$0xf] %v221_v12 }
  0x34   : > { %224 = vst [vmem:[%s2697_s4 + $0x34] sm:$0xf] %v223_v13  ;;  %v225_v14 = vld [vmem:[%s2690_s9 + $0x70] sm:$0xf]  ;;  %v227_v15 = vld [vmem:[%s2690_s9 + $0x78] sm:$0xf] }
  0x35   : > { %v229_v16 = vld [vmem:[%s2690_s9 + $0x80] sm:$0xf]  ;;  %226 = vst [vmem:[%s2697_s4 + $0x38] sm:$0xf] %v225_v14  ;;  %228 = vst [vmem:[%s2697_s4 + $0x3c] sm:$0xf] %v227_v15 }
  0x36   : > { %230 = vst [vmem:[%s2697_s4 + $0x40] sm:$0xf] %v229_v16  ;;  %v231_v17 = vld [vmem:[%s2690_s9 + $0x88] sm:$0xf]  ;;  %v233_v18 = vld [vmem:[%s2690_s9 + $0x90] sm:$0xf] }
  0x37   : > { %v235_v19 = vld [vmem:[%s2690_s9 + $0x98] sm:$0xf]  ;;  %232 = vst [vmem:[%s2697_s4 + $0x44] sm:$0xf] %v231_v17  ;;  %234 = vst [vmem:[%s2697_s4 + $0x48] sm:$0xf] %v233_v18 }
  0x38   : > { %236 = vst [vmem:[%s2697_s4 + $0x4c] sm:$0xf] %v235_v19  ;;  %v237_v20 = vld [vmem:[%s2690_s9 + $0xa0] sm:$0xf]  ;;  %v239_v21 = vld [vmem:[%s2690_s9 + $0xa8] sm:$0xf] }
  0x39   : > { %v241_v22 = vld [vmem:[%s2690_s9 + $0xb0] sm:$0xf]  ;;  %238 = vst [vmem:[%s2697_s4 + $0x50] sm:$0xf] %v237_v20  ;;  %240 = vst [vmem:[%s2697_s4 + $0x54] sm:$0xf] %v239_v21 }
  0x3a   : > { %242 = vst [vmem:[%s2697_s4 + $0x58] sm:$0xf] %v241_v22  ;;  %v243_v23 = vld [vmem:[%s2690_s9 + $0xb8] sm:$0xf]  ;;  %v245_v24 = vld [vmem:[%s2690_s9 + $0xc0] sm:$0xf] }
  0x3b   : > { %v247_v25 = vld [vmem:[%s2690_s9 + $0xc8] sm:$0xf]  ;;  %244 = vst [vmem:[%s2697_s4 + $0x5c] sm:$0xf] %v243_v23  ;;  %246 = vst [vmem:[%s2697_s4 + $0x60] sm:$0xf] %v245_v24 }
  0x3c   : > { %248 = vst [vmem:[%s2697_s4 + $0x64] sm:$0xf] %v247_v25  ;;  %v249_v26 = vld [vmem:[%s2690_s9 + $0xd0] sm:$0xf]  ;;  %v251_v27 = vld [vmem:[%s2690_s9 + $0xd8] sm:$0xf] }
  0x3d   : > { %v253_v28 = vld [vmem:[%s2690_s9 + $0xe0] sm:$0xf]  ;;  %250 = vst [vmem:[%s2697_s4 + $0x68] sm:$0xf] %v249_v26  ;;  %252 = vst [vmem:[%s2697_s4 + $0x6c] sm:$0xf] %v251_v27 }
  0x3e   : > { %254 = vst [vmem:[%s2697_s4 + $0x70] sm:$0xf] %v253_v28  ;;  %v255_v29 = vld [vmem:[%s2690_s9 + $0xe8] sm:$0xf]  ;;  %v257_v30 = vld [vmem:[%s2690_s9 + $0xf0] sm:$0xf] }
  0x3f   : > { %v259_v31 = vld [vmem:[%s2690_s9 + $0xf8] sm:$0xf]  ;;  %256 = vst [vmem:[%s2697_s4 + $0x74] sm:$0xf] %v255_v29  ;;  %258 = vst [vmem:[%s2697_s4 + $0x78] sm:$0xf] %v257_v30 }
  0x40   : > { %260 = vst [vmem:[%s2697_s4 + $0x7c] sm:$0xf] %v259_v31  ;;  %v261_v32 = vld [vmem:[%s2690_s9 + $0x100] sm:$0xf]  ;;  %v263_v33 = vld [vmem:[%s2690_s9 + $0x108] sm:$0xf] }
  0x41   : > { %v265_v34 = vld [vmem:[%s2690_s9 + $0x110] sm:$0xf]  ;;  %262 = vst [vmem:[%s2697_s4 + $0x80] sm:$0xf] %v261_v32  ;;  %264 = vst [vmem:[%s2697_s4 + $0x84] sm:$0xf] %v263_v33 }
  0x42   : > { %266 = vst [vmem:[%s2697_s4 + $0x88] sm:$0xf] %v265_v34  ;;  %v267_v35 = vld [vmem:[%s2690_s9 + $0x118] sm:$0xf]  ;;  %v269_v36 = vld [vmem:[%s2690_s9 + $0x120] sm:$0xf] }
  0x43   : > { %v271_v37 = vld [vmem:[%s2690_s9 + $0x128] sm:$0xf]  ;;  %268 = vst [vmem:[%s2697_s4 + $0x8c] sm:$0xf] %v267_v35  ;;  %270 = vst [vmem:[%s2697_s4 + $0x90] sm:$0xf] %v269_v36 }
  0x44   : > { %272 = vst [vmem:[%s2697_s4 + $0x94] sm:$0xf] %v271_v37  ;;  %v273_v38 = vld [vmem:[%s2690_s9 + $0x130] sm:$0xf]  ;;  %v275_v39 = vld [vmem:[%s2690_s9 + $0x138] sm:$0xf] }
  0x45   : > { %v277_v40 = vld [vmem:[%s2690_s9 + $0x140] sm:$0xf]  ;;  %274 = vst [vmem:[%s2697_s4 + $0x98] sm:$0xf] %v273_v38  ;;  %276 = vst [vmem:[%s2697_s4 + $0x9c] sm:$0xf] %v275_v39 }
  0x46   : > { %278 = vst [vmem:[%s2697_s4 + $0xa0] sm:$0xf] %v277_v40  ;;  %v279_v41 = vld [vmem:[%s2690_s9 + $0x148] sm:$0xf]  ;;  %v281_v42 = vld [vmem:[%s2690_s9 + $0x150] sm:$0xf] }
  0x47   : > { %v283_v43 = vld [vmem:[%s2690_s9 + $0x158] sm:$0xf]  ;;  %280 = vst [vmem:[%s2697_s4 + $0xa4] sm:$0xf] %v279_v41  ;;  %282 = vst [vmem:[%s2697_s4 + $0xa8] sm:$0xf] %v281_v42 }
  0x48   : > { %284 = vst [vmem:[%s2697_s4 + $0xac] sm:$0xf] %v283_v43  ;;  %v285_v44 = vld [vmem:[%s2690_s9 + $0x160] sm:$0xf]  ;;  %v287_v45 = vld [vmem:[%s2690_s9 + $0x168] sm:$0xf] }
  0x49   : > { %v289_v46 = vld [vmem:[%s2690_s9 + $0x170] sm:$0xf]  ;;  %286 = vst [vmem:[%s2697_s4 + $0xb0] sm:$0xf] %v285_v44  ;;  %288 = vst [vmem:[%s2697_s4 + $0xb4] sm:$0xf] %v287_v45 }
  0x4a   : > { %290 = vst [vmem:[%s2697_s4 + $0xb8] sm:$0xf] %v289_v46  ;;  %v291_v47 = vld [vmem:[%s2690_s9 + $0x178] sm:$0xf]  ;;  %v293_v48 = vld [vmem:[%s2690_s9 + $0x180] sm:$0xf] }
  0x4b   : > { %v295_v49 = vld [vmem:[%s2690_s9 + $0x188] sm:$0xf]  ;;  %292 = vst [vmem:[%s2697_s4 + $0xbc] sm:$0xf] %v291_v47  ;;  %294 = vst [vmem:[%s2697_s4 + $0xc0] sm:$0xf] %v293_v48 }
  0x4c   : > { %296 = vst [vmem:[%s2697_s4 + $0xc4] sm:$0xf] %v295_v49  ;;  %v297_v50 = vld [vmem:[%s2690_s9 + $0x190] sm:$0xf]  ;;  %v299_v51 = vld [vmem:[%s2690_s9 + $0x198] sm:$0xf] }
  0x4d   : > { %v301_v52 = vld [vmem:[%s2690_s9 + $0x1a0] sm:$0xf]  ;;  %298 = vst [vmem:[%s2697_s4 + $0xc8] sm:$0xf] %v297_v50  ;;  %300 = vst [vmem:[%s2697_s4 + $0xcc] sm:$0xf] %v299_v51 }
  0x4e   : > { %302 = vst [vmem:[%s2697_s4 + $0xd0] sm:$0xf] %v301_v52  ;;  %v303_v53 = vld [vmem:[%s2690_s9 + $0x1a8] sm:$0xf]  ;;  %v305_v54 = vld [vmem:[%s2690_s9 + $0x1b0] sm:$0xf] }
  0x4f   : > { %v307_v55 = vld [vmem:[%s2690_s9 + $0x1b8] sm:$0xf]  ;;  %304 = vst [vmem:[%s2697_s4 + $0xd4] sm:$0xf] %v303_v53  ;;  %306 = vst [vmem:[%s2697_s4 + $0xd8] sm:$0xf] %v305_v54 }
  0x50   : > { %308 = vst [vmem:[%s2697_s4 + $0xdc] sm:$0xf] %v307_v55  ;;  %v309_v56 = vld [vmem:[%s2690_s9 + $0x1c0] sm:$0xf]  ;;  %v311_v57 = vld [vmem:[%s2690_s9 + $0x1c8] sm:$0xf] }
  0x51   : > { %v313_v58 = vld [vmem:[%s2690_s9 + $0x1d0] sm:$0xf]  ;;  %310 = vst [vmem:[%s2697_s4 + $0xe0] sm:$0xf] %v309_v56  ;;  %312 = vst [vmem:[%s2697_s4 + $0xe4] sm:$0xf] %v311_v57 }
  0x52   : > { %314 = vst [vmem:[%s2697_s4 + $0xe8] sm:$0xf] %v313_v58  ;;  %v315_v59 = vld [vmem:[%s2690_s9 + $0x1d8] sm:$0xf]  ;;  %v317_v60 = vld [vmem:[%s2690_s9 + $0x1e0] sm:$0xf] }
  0x53   : > { %v319_v61 = vld [vmem:[%s2690_s9 + $0x1e8] sm:$0xf]  ;;  %316 = vst [vmem:[%s2697_s4 + $0xec] sm:$0xf] %v315_v59  ;;  %318 = vst [vmem:[%s2697_s4 + $0xf0] sm:$0xf] %v317_v60 }
  0x54   : > { %320 = vst [vmem:[%s2697_s4 + $0xf4] sm:$0xf] %v319_v61  ;;  %v321_v62 = vld [vmem:[%s2690_s9 + $0x1f0] sm:$0xf]  ;;  %v323_v63 = vld [vmem:[%s2690_s9 + $0x1f8] sm:$0xf] }
  0x55   : > { %v325_v0 = vld [vmem:[%s2690_s9 + $0x200] sm:$0xf]  ;;  %322 = vst [vmem:[%s2697_s4 + $0xf8] sm:$0xf] %v321_v62  ;;  %324 = vst [vmem:[%s2697_s4 + $0xfc] sm:$0xf] %v323_v63 }
  0x56   : > { %326 = vst [vmem:[%s2697_s4 + $0x100] sm:$0xf] %v325_v0  ;;  %v327_v1 = vld [vmem:[%s2690_s9 + $0x208] sm:$0xf]  ;;  %v329_v2 = vld [vmem:[%s2690_s9 + $0x210] sm:$0xf] }
  0x57   : > { %v331_v3 = vld [vmem:[%s2690_s9 + $0x218] sm:$0xf]  ;;  %328 = vst [vmem:[%s2697_s4 + $0x104] sm:$0xf] %v327_v1  ;;  %330 = vst [vmem:[%s2697_s4 + $0x108] sm:$0xf] %v329_v2 }
  0x58   : > { %332 = vst [vmem:[%s2697_s4 + $0x10c] sm:$0xf] %v331_v3  ;;  %v333_v4 = vld [vmem:[%s2690_s9 + $0x220] sm:$0xf]  ;;  %v335_v5 = vld [vmem:[%s2690_s9 + $0x228] sm:$0xf] }
  0x59   : > { %v337_v6 = vld [vmem:[%s2690_s9 + $0x230] sm:$0xf]  ;;  %334 = vst [vmem:[%s2697_s4 + $0x110] sm:$0xf] %v333_v4  ;;  %336 = vst [vmem:[%s2697_s4 + $0x114] sm:$0xf] %v335_v5 }
  0x5a   : > { %338 = vst [vmem:[%s2697_s4 + $0x118] sm:$0xf] %v337_v6  ;;  %v339_v7 = vld [vmem:[%s2690_s9 + $0x238] sm:$0xf] }
  0x5b   : > { %340 = vst [vmem:[%s2697_s4 + $0x11c] sm:$0xf] %v339_v7 }
  0x5c PF: > { %p2086_p1 = scmp.ge.s32.totalorder %s2548_s23, 1  ;;  %p513_p2 = scmp.lt.s32.totalorder %s2548_s23, 9 }
  0x5e   : > { %p514_p3 = pnand %p2086_p1, %p513_p2 }
  0x5f   : > { %p555_p4 = scmp.lt.s32.totalorder (!%p514_p3), %s2532_s19, 1  ;;  %p557_p5 = scmp.lt.s32.totalorder (!%p514_p3), %s2528_s18, 1 }
  0x60   : > { %517 = sbr.rel (%p514_p3) target bundleno = 545 (0x221), region = 69  ;;  %s520_s10 = sand.u32 (!%p514_p3), 1, %s2516_s15  }
  0x61   : > { %s2277_s8 = smul.u32 (!%p514_p3), 288, %s520_s10  ;;  %s2551_s1 = smov (!%p514_p3), 64  }
  0x62   : > { %p564_p6 = scmp.lt.s32.totalorder (!%p514_p3), %s2524_s17, 1  ;;  %s2248_s4 = sshll.u32 (!%p514_p3), %s2532_s19, 6 }
  0x63   : > { %s2852_s15 = scalar_lea.vmem (!%p514_p3), [#allocation2], %s2277_s8 }
  0x65   : > { %v2550_v8 = vmov 0   ;;  %s556_s11 = scalar_select %p555_p4, %s2532_s19, 1  ;;  %v2388_v9 = vld [vmem:[%s2852_s15 + $0x38] sm:$0xff]   ;;  %vm608_vm0 = vsmask.f32 7424  ;;  %vm737_vm1 = vcmask 1046528  }
  0x66   : > { %1342 = vmatprep.subr.bf16.mxu1 %v2550_v8  ;;  %1149 = vmatprep.subr.bf16.mxu0 %v2550_v8  ;;  %s558_s24 = scalar_select %p557_p5, %s2528_s18, 1  ;;  %vm762_vm2 = vcmask 523264  }
  0x67   : > { %s2279_s25 = smul.u32 60, %s556_s11  ;;  %1343 = vmatpush1.bf16.msra.mxu1 %v2388_v9 }
  0x68   : > { %s2278_s6 = smul.u32 30, %s558_s24  ;;  %1344 = vmatprep.subr.bf16.mxu1 %v2550_v8 }
  0x6a   : > { %s561_s29 = sadd.s32 %s2279_s25, %s2278_s6  ;;  %s552_s25 = sand.u32 1, %s2508_s13  }
  0x6b   : > { %s2088_s9 = sshll.u32 %s561_s29, 3  ;;  %s2087_s6 = sshll.u32 %s552_s25, 7 }
  0x6c   : > { %s2850_s28 = scalar_lea.vmem %s3572_s0, %s2088_s9  ;;  %s3443_s8 = scalar_lea.vmem [#allocation3], %s2087_s6 }
  0x6d   : > { %v568_v10 = vld [vmem:[%s2850_s28] sm:$0xff]  ;;  %v569_v11 = vld [vmem:[%s2850_s28 + $0x8] sm:$0xff]  ;;  %v570_v12 = vld [vmem:[%s2850_s28 + $0x10] sm:$0x3]  ;;  %s2247_s29 = sshll.u32 %s2528_s18, 5  ;;  %s1962_s19 = sshll.u32 %s3443_s8, 4  ;;  %s3504_s19 = int_to_ptr.vmem [resolvable:$true] %s1962_s19 }
  0x6e   : > { %v2858_v13 = vpack.c.bf16 %v569_v11, %v568_v10  ;;  %v2860_v14 = vpack.c.bf16 %v570_v12, %v570_v12  ;;  %v2089_v15 = vld [vmem:[%s2850_s28 + $0x18] sm:$0xff]  ;;  %v2090_v16 = vld [vmem:[%s2850_s28 + $0x20] sm:$0xff]  ;;  %v2091_v17 = vld [vmem:[%s2850_s28 + $0x28] sm:$0x3]  ;;  %s1957_s9 = sadd.s32 %s2524_s17, %s2247_s29  ;;  %s3509_s10 = scalar_lea.sflag [#allocation4], %s552_s25 }
  0x6f   : > { %v2865_v18 = vpack.c.bf16 %v2090_v16, %v2089_v15  ;;  %v2867_v19 = vpack.c.bf16 %v2091_v17, %v2091_v17  ;;  %v573_v20 = vld [vmem:[%s2850_s28 + $0x28] sm:$0x3]  ;;  %v2092_v21 = vld [vmem:[%s2850_s28 + $0x30] sm:$0xff]  ;;  %v2093_v22 = vld [vmem:[%s2850_s28 + $0x38] sm:$0xff]  ;;  %s2424_s11 = scalar_lea.vmem %s3504_s19, 2048 }
  0x70   : > { %v610_v23 = vshrl.u32 %v2858_v13, 16  ;;  %v612_v24 = vshll.u32 %v2858_v13, 16  ;;  %v617_v25 = vshll.u32 %v2860_v14, 16  ;;  %v2876_v26 = vpack.c.bf16 %v573_v20, %v573_v20  ;;  %v2094_v27 = vld [vmem:[%s2850_s28 + $0x40] sm:$0x3]  ;;  %v2095_v33 = vld [vmem:[%s2850_s28 + $0x48] sm:$0xff]  ;;  %p2425_p7 = scmp.ne.s32.totalorder %s3504_s19, %s2424_s11 }
  0x71   : > { %v853_v28 = vshrl.u32 %v2865_v18, 16  ;;  %v855_v29 = vshll.u32 %v2865_v18, 16  ;;  %v860_v30 = vshll.u32 %v2867_v19, 16  ;;  %v2882_v31 = vpack.c.bf16 %v2093_v22, %v2092_v21  ;;  %v576_v32 = vld [vmem:[%s2850_s28 + $0x40] sm:$0x3]  ;;  %v2096_v38 = vld [vmem:[%s2850_s28 + $0x50] sm:$0xff] }
  0x72   : > { %v614_v34 = vrot.slane %v612_v24, 1  ;;  %v619_v35 = vrot.slane %v617_v25, 1  ;;  %v629_v36 = vshll.u32 %v2876_v26, 16  ;;  %v2887_v37 = vpack.c.bf16 %v2094_v27, %v2094_v27  ;;  %v2097_v39 = vld [vmem:[%s2850_s28 + $0x58] sm:$0x3]  ;;  %v2098_v53 = vld [vmem:[%s2850_s28 + $0x60] sm:$0xff]  ;;  %p2426_p8 = pnand %p2425_p7, %p2666_p9 }
  0x73   : > { %v857_v40 = vrot.slane %v855_v29, 1  ;;  %v862_v41 = vrot.slane %v860_v30, 1  ;;  %v865_v42 = vshrl.u32 %v2882_v31, 16  ;;  %v867_v43 = vshll.u32 %v2882_v31, 16  ;;  %v579_v44 = vld [vmem:[%s2850_s28 + $0x58] sm:$0x3] }
  0x74   : > { %v615_v45 = vor.u32 %v614_v34, %v610_v23  ;;  %v631_v46 = vrot.slane %v629_v36, 1  ;;  %v872_v47 = vshll.u32 %v2887_v37, 16  ;;  %v2895_v48 = vpack.c.bf16 %v576_v32, %v576_v32  ;;  %v2099_v54 = vld [vmem:[%s2850_s28 + $0x68] sm:$0xff]  ;;  %v2100_v59 = vld [vmem:[%s2850_s28 + $0x70] sm:$0x3]  ;;  %v2101_v5 = vld [vmem:[%s2850_s28 + $0x78] sm:$0xff]  ;;  %p2427_p10 = pneg %p2426_p8 }
  0x75   : > { %v858_v49 = vor.u32 %v857_v40, %v853_v28  ;;  %v869_v50 = vrot.slane %v867_v43, 1  ;;  %v2897_v51 = vpack.c.bf16 %v2096_v38, %v2095_v33  ;;  %v2899_v52 = vpack.c.bf16 %v2097_v39, %v2097_v39  ;;  %v582_v60 = vld [vmem:[%s2850_s28 + $0x70] sm:$0x3]  ;;  %v2102_v11 = vld [vmem:[%s2850_s28 + $0x80] sm:$0xff]  ;;  %v2103_v12 = vld [vmem:[%s2850_s28 + $0x88] sm:$0x3] }
  0x76   : > { %v620_v55 = vsel %vm608_vm0, %v615_v45, %v619_v35  ;;  %v874_v56 = vrot.slane %v872_v47, 1  ;;  %v641_v57 = vshll.u32 %v2895_v48, 16  ;;  %v2905_v58 = vpack.c.bf16 %v579_v44, %v579_v44  ;;  %v585_v15 = vld [vmem:[%s2850_s28 + $0x88] sm:$0x3]  ;;  %v2104_v22 = vld [vmem:[%s2850_s28 + $0x90] sm:$0xff]  ;;  %v2105_v23 = vld [vmem:[%s2850_s28 + $0x98] sm:$0xff] }
  0x77   : > { %705 = vrot.lane.b32.xlu0 %v620_v55, %s2551_s1  ;;  %v863_v61 = vsel %vm608_vm0, %v858_v49, %v862_v41  ;;  %v632_v62 = vsel %vm608_vm0, %v858_v49, %v631_v46  ;;  %v2912_v63 = vor.u32 %v869_v50, %v865_v42  ;;  %v877_v0 = vshrl.u32 %v2897_v51, 16  ;;  %v2389_v24 = vld [vmem:[%s2852_s15 + $0x98] sm:$0xff]   ;;  %v2106_v35 = vld [vmem:[%s2850_s28 + $0xa0] sm:$0x3]  ;;  %v2390_v42 = vld [vmem:[%s2852_s15 + $0x30] sm:$0xff]  }
  0x78   : > { %707 = vrot.lane.b32.xlu1 %v632_v62, %s2551_s1  ;;  %v643_v1 = vrot.slane %v641_v57, 1  ;;  %v879_v2 = vshll.u32 %v2897_v51, 16  ;;  %v884_v3 = vshll.u32 %v2899_v52, 16  ;;  %v653_v4 = vshll.u32 %v2905_v58, 16  ;;  %v588_v36 = vld [vmem:[%s2850_s28 + $0xa0] sm:$0x3]  ;;  %1150 = vmatpush1.bf16.msra.mxu0 %v2389_v24 }
  0x79   : > { %v875_v6 = vsel %vm608_vm0, %v2912_v63, %v874_v56  ;;  %v2922_v7 = vpack.c.bf16 %v2099_v54, %v2098_v53  ;;  %v2924_v9 = vpack.c.bf16 %v2100_v59, %v2100_v59  ;;  %v2926_v10 = vpack.c.bf16 %v582_v60, %v582_v60  ;;  %v2107_v47 = vld [vmem:[%s2850_s28 + $0xa8] sm:$0xff]  ;;  %v2108_v49 = vld [vmem:[%s2850_s28 + $0xb0] sm:$0xff]  ;;  %v2109_v50 = vld [vmem:[%s2850_s28 + $0xb8] sm:$0x3]  ;;  %1151 = vmatprep.subr.bf16.mxu0 %v2550_v8 }
  0x7a   : > { %v644_v16 = vsel %vm608_vm0, %v2912_v63, %v643_v1  ;;  %v881_v17 = vrot.slane %v879_v2, 1  ;;  %v886_v20 = vrot.slane %v884_v3, 1  ;;  %v655_v21 = vrot.slane %v653_v4, 1  ;;  %v591_v53 = vld [vmem:[%s2850_s28 + $0xb8] sm:$0x3]  ;;  %v2110_v59 = vld [vmem:[%s2850_s28 + $0xc0] sm:$0xff]  ;;  %1345 = vmatpush1.bf16.msra.mxu1 %v2390_v42 }
  0x7b   : > { %948 = vrot.lane.b32.xlu0 %v863_v61, %s2551_s1  ;;  %v889_v25 = vshrl.u32 %v2922_v7, 16  ;;  %v891_v27 = vshll.u32 %v2922_v7, 16  ;;  %v896_v28 = vshll.u32 %v2924_v9, 16  ;;  %v665_v29 = vshll.u32 %v2926_v10, 16  ;;  %v2111_v60 = vld [vmem:[%s2850_s28 + $0xc8] sm:$0xff]  ;;  %v2391_v2 = vld [vmem:[%s2852_s15 + $0x90] sm:$0xff]   ;;  %1346 = vmatprep.subr.bf16.mxu1 %v2550_v8 }
  0x7c   : > { %950 = vrot.lane.b32.xlu1 %v875_v6, %s2551_s1  ;;  %v2942_v30 = vor.u32 %v881_v17, %v877_v0  ;;  %v2944_v32 = vpack.c.bf16 %v2102_v11, %v2101_v5  ;;  %v2946_v33 = vpack.c.bf16 %v2103_v12, %v2103_v12  ;;  %v2948_v34 = vpack.c.bf16 %v585_v15, %v585_v15  ;;  %v2392_v17 = vld [vmem:[%s2852_s15 + $0x28] sm:$0xff]   ;;  %v2191_v24 = vld [vmem:[%s2850_s28 + $0xa0] sm:$0x3] }
  0x7d   : > { %v893_v38 = vrot.slane %v891_v27, 1  ;;  %v898_v39 = vrot.slane %v896_v28, 1  ;;  %v667_v40 = vrot.slane %v665_v29, 1  ;;  %v2952_v41 = vpack.c.bf16 %v2105_v23, %v2104_v22  ;;  %1152 = vmatpush1.bf16.msra.mxu0 %v2391_v2  ;;  %v2393_v27 = vld [vmem:[%s2852_s15 + $0x88] sm:$0xff]  }
  0x7e   : > { %v887_v43 = vsel %vm608_vm0, %v2942_v30, %v886_v20  ;;  %v656_v44 = vsel %vm608_vm0, %v2942_v30, %v655_v21  ;;  %v901_v45 = vshrl.u32 %v2944_v32, 16  ;;  %v903_v46 = vshll.u32 %v2944_v32, 16  ;;  %1347 = vmatpush1.bf16.msra.mxu1 %v2392_v17  ;;  %1153 = vmatprep.subr.bf16.mxu0 %v2550_v8  ;;  %v2185_v17 = vld [vmem:[%s2850_s28 + $0x70] sm:$0x3] }
  0x7f   : > { %709 = vrot.lane.b32.xlu0 %v644_v16, %s2551_s1  ;;  %v2967_v54 = vor.u32 %v893_v38, %v889_v25  ;;  %v908_v55 = vshll.u32 %v2946_v33, 16  ;;  %v677_v56 = vshll.u32 %v2948_v34, 16  ;;  %v2971_v57 = vpack.c.bf16 %v2106_v35, %v2106_v35  ;;  %v2112_v16 = vld [vmem:[%s2850_s28 + $0xd0] sm:$0x3]  ;;  %v2179_v25 = vld [vmem:[%s2850_s28 + $0x40] sm:$0x3]  ;;  %1348 = vmatprep.subr.bf16.mxu1 %v2550_v8 }
  0x80   : > { %952 = vrot.lane.b32.xlu1 %v887_v43, %s2551_s1  ;;  %v905_v61 = vrot.slane %v903_v46, 1  ;;  %v913_v62 = vshrl.u32 %v2952_v41, 16  ;;  %v915_v0 = vshll.u32 %v2952_v41, 16  ;;  %v2978_v1 = vpack.c.bf16 %v588_v36, %v588_v36  ;;  %v2194_v36 = vld [vmem:[%s2850_s28 + $0xb8] sm:$0x3] }
  0x81   : > { %v899_v3 = vsel %vm608_vm0, %v2967_v54, %v898_v39  ;;  %v910_v4 = vrot.slane %v908_v55, 1  ;;  %v679_v5 = vrot.slane %v677_v56, 1  ;;  %v920_v12 = vshll.u32 %v2971_v57, 16  ;;  %v2182_v38 = vld [vmem:[%s2850_s28 + $0x58] sm:$0x3]  ;;  %v2394_v39 = vld [vmem:[%s2852_s15 + $0x20] sm:$0xff]   ;;  %1154 = vmatpush1.bf16.msra.mxu0 %v2393_v27 }
  0x82   : > { %v2984_v6 = vor.u32 %v905_v61, %v901_v45  ;;  %v917_v11 = vrot.slane %v915_v0, 1  ;;  %v689_v15 = vshll.u32 %v2978_v1, 16  ;;  %v2991_v20 = vpack.c.bf16 %v2108_v49, %v2107_v47  ;;  %1155 = vmatprep.subr.bf16.mxu0 %v2550_v8  ;;  %1349 = vmatpush1.bf16.msra.mxu1 %v2394_v39  ;;  %v2198_v27 = vld [vmem:[%s2850_s28 + $0xd8] sm:$0xff]  ;;  %v2199_v39 = vld [vmem:[%s2850_s28 + $0xe0] sm:$0xff] }
  0x83   : > { %711 = vrot.lane.b32.xlu0 %v656_v44, %s2551_s1  ;;  %v2993_v21 = vpack.c.bf16 %v2109_v50, %v2109_v50  ;;  %v2995_v22 = vpack.c.bf16 %v591_v53, %v591_v53  ;;  %v2997_v23 = vpack.c.bf16 %v2111_v60, %v2110_v59  ;;  %v668_v28 = vsel %vm608_vm0, %v2967_v54, %v667_v40  ;;  %v2197_v40 = vld [vmem:[%s2850_s28 + $0xd0] sm:$0x3]  ;;  %v2395_v60 = vld [vmem:[%s2852_s15 + $0x80] sm:$0xff]  }
  0x84   : > { %954 = vrot.lane.b32.xlu1 %v899_v3, %s2551_s1  ;;  %v3005_v29 = vor.u32 %v917_v11, %v913_v62  ;;  %v922_v35 = vrot.slane %v920_v12, 1  ;;  %v911_v42 = vsel %vm608_vm0, %v2984_v6, %v910_v4  ;;  %v925_v43 = vshrl.u32 %v2991_v20, 16  ;;  %v2396_v3 = vld [vmem:[%s2852_s15 + $0x18] sm:$0xff]   ;;  %1350 = vmatprep.subr.bf16.mxu1 %v2550_v8 }
  0x85   : > { %v927_v44 = vshll.u32 %v2991_v20, 16  ;;  %v932_v45 = vshll.u32 %v2993_v21, 16  ;;  %v680_v46 = vsel %vm608_vm0, %v2984_v6, %v679_v5  ;;  %v691_v47 = vrot.slane %v689_v15, 1  ;;  %1156 = vmatpush1.bf16.msra.mxu0 %v2395_v60 }
  0x86   : > { %v701_v49 = vshll.u32 %v2995_v22, 16  ;;  %v3021_v50 = vpack.c.bf16 %v2112_v16, %v2112_v16  ;;  %v923_v53 = vsel %vm608_vm0, %v3005_v29, %v922_v35  ;;  %v937_v56 = vshrl.u32 %v2997_v23, 16  ;;  %1157 = vmatprep.subr.bf16.mxu0 %v2550_v8  ;;  %1351 = vmatpush1.bf16.msra.mxu1 %v2396_v3 }
  0x87   : > { %713 = vrot.lane.b32.xlu0 %v668_v28, %s2551_s1  ;;  %v929_v55 = vrot.slane %v927_v44, 1  ;;  %v939_v59 = vshll.u32 %v2997_v23, 16  ;;  %v934_v61 = vrot.slane %v932_v45, 1  ;;  %v3032_v0 = vpack.c.bf16 %v2191_v24, %v2191_v24  ;;  %v2397_v24 = vld [vmem:[%s2852_s15 + $0x78] sm:$0xff]   ;;  %1352 = vmatprep.subr.bf16.mxu1 %v2550_v8 }
  0x88   : > { %956 = vrot.lane.b32.xlu1 %v911_v42, %s2551_s1  ;;  %v944_v62 = vshll.u32 %v3021_v50, 16  ;;  %v3034_v2 = vpack.c.bf16 %v2179_v25, %v2179_v25  ;;  %v3039_v11 = vpack.c.bf16 %v2194_v36, %v2194_v36  ;;  %v3041_v12 = vpack.c.bf16 %v2182_v38, %v2182_v38  ;;  %v2200_v42 = vld [vmem:[%s2850_s28 + $0xe8] sm:$0x3] }
  0x89   : > { %v3037_v4 = vor.u32 %v929_v55, %v925_v43  ;;  %v941_v5 = vrot.slane %v939_v59, 1  ;;  %v703_v15 = vrot.slane %v701_v49, 1  ;;  %v3044_v16 = vpack.c.bf16 %v2197_v40, %v2197_v40  ;;  %v2398_v43 = vld [vmem:[%s2852_s15 + $0x10] sm:$0xff]   ;;  %1158 = vmatpush1.bf16.msra.mxu0 %v2397_v24 }
  0x8a   : > { %v1488_v25 = vshll.u32 %v3034_v2, 16  ;;  %v692_v28 = vsel %vm608_vm0, %v3005_v29, %v691_v47  ;;  %v946_v36 = vrot.slane %v944_v62, 1  ;;  %v1536_v38 = vshll.u32 %v3032_v0, 16  ;;  %v2399_v49 = vld [vmem:[%s2852_s15 + $0x70] sm:$0xff]   ;;  %1159 = vmatprep.subr.bf16.mxu0 %v2550_v8  ;;  %1353 = vmatpush1.bf16.msra.mxu1 %v2398_v43  ;;  %v2400_v62 = vld [vmem:[%s2852_s15 + $0x8] sm:$0xff]  }
  0x8b   : > { %715 = vrot.lane.b32.xlu0 %v680_v46, %s2551_s1  ;;  %v935_v35 = vsel %vm608_vm0, %v3037_v4, %v934_v61  ;;  %v3061_v44 = vor.u32 %v941_v5, %v937_v56  ;;  %v1548_v45 = vshll.u32 %v3039_v11, 16  ;;  %v1500_v40 = vshll.u32 %v3041_v12, 16  ;;  %v2188_v56 = vld [vmem:[%s2850_s28 + $0x88] sm:$0x3]  ;;  %1354 = vmatprep.subr.bf16.mxu1 %v2550_v8  ;;  %s565_s28 = scalar_select %p564_p6, %s2524_s17, 1 }
  0x8c   : > { %958 = vrot.lane.b32.xlu1 %v923_v53, %s2551_s1  ;;  %v3065_v46 = vpack.c.bf16 %v2185_v17, %v2185_v17  ;;  %v1560_v47 = vshll.u32 %v3044_v16, 16  ;;  %v1490_v53 = vrot.slane %v1488_v25, 1  ;;  %v3071_v55 = vpack.c.bf16 %v2199_v39, %v2198_v27  ;;  %s1959_s17 = sadd.s32 %s2248_s4, %s1957_s9 }
  0x8d   : > { %v704_v59 = vsel %vm608_vm0, %v3037_v4, %v703_v15  ;;  %v3079_v61 = vpack.c.bf16 %v2200_v42, %v2200_v42  ;;  %v947_v3 = vsel %vm608_vm0, %v3061_v44, %v946_v36  ;;  %v1538_v5 = vrot.slane %v1536_v38, 1  ;;  %1160 = vmatpush1.bf16.msra.mxu0 %v2399_v49  ;;  %v2401_v15 = vld [vmem:[%s2852_s15 + $0x68] sm:$0xff]   ;;  %v2402_v36 = vld [vmem:[%s2852_s15] sm:$0xff]   ;;  %v2404_v49 = vld [vmem:[%s2852_s15 + $0x58] sm:$0xff]   ;;  %s566_s24 = scalar_lea.vmem %s3574_s2, %s565_s28  ;;  %s2249_s18 = sshll.u32 %s1959_s17, 7 }
  0x8e   : > { %v1512_v60 = vshll.u32 %v3065_v46, 16  ;;  %v1550_v17 = vrot.slane %v1548_v45, 1  ;;  %v1502_v24 = vrot.slane %v1500_v40, 1  ;;  %v1562_v25 = vrot.slane %v1560_v47, 1  ;;  %1161 = vmatprep.subr.bf16.mxu0 %v2550_v8  ;;  %1355 = vmatpush1.bf16.msra.mxu1 %v2400_v62  ;;  %v2403_v45 = vld [vmem:[%s2852_s15 + $0x60] sm:$0xff]   ;;  %v2405_v62 = vld [vmem:[%s2852_s15 + $0xb8] sm:$0xff]   ;;  %s3502_s28 = scalar_lea.hbm %s3575_s3, %s2249_s18 }
  0x8f   : > { %717 = vrot.lane.b32.xlu0 %v692_v28, %s2551_s1  ;;  %v1565_v27 = vshrl.u32 %v3071_v55, 16  ;;  %v1567_v28 = vshll.u32 %v3071_v55, 16  ;;  %v1491_v38 = vsel %vm608_vm0, %v2912_v63, %v1490_v53  ;;  %v1572_v42 = vshll.u32 %v3079_v61, 16  ;;  %1356 = vmatprep.subr.bf16.mxu1 %v2550_v8 }
  0x90   : > { %960 = vrot.lane.b32.xlu1 %v935_v35, %s2551_s1  ;;  %v3089_v35 = vpack.c.bf16 %v2188_v56, %v2188_v56  ;;  %v1514_v39 = vrot.slane %v1512_v60, 1  ;;  %v1539_v43 = vsel %vm608_vm0, %v3005_v29, %v1538_v5  ;;  %v738_v40 = vrot.slane %v2858_v13, 1 }
  0x91   : > { %1162 = vmatpush1.bf16.msra.mxu0 %v2401_v15  ;;  %v739_v63 = vrot.slane %v2860_v14, 1  ;;  %v1503_v29 = vsel %vm608_vm0, %v2942_v30, %v1502_v24  ;;  %v980_v53 = vrot.slane %v2865_v18, 1  ;;  %v1551_v56 = vsel %vm608_vm0, %v3037_v4, %v1550_v17  ;;  %v2406_v24 = vld [vmem:[%s2852_s15 + $0x50] sm:$0xff]  }
  0x92   : > { %v1524_v47 = vshll.u32 %v3089_v35, 16  ;;  %1163 = vmatprep.subr.bf16.mxu0 %v2550_v8  ;;  %1357 = vmatpush1.bf16.msra.mxu1 %v2402_v36  ;;  %v981_v14 = vrot.slane %v2867_v19, 1  ;;  %v742_v30 = vrot.slane %v2876_v26, 1  ;;  %v1574_v4 = vrot.slane %v1572_v42, 1  ;;  %v2407_v42 = vld [vmem:[%s2852_s15 + $0xb0] sm:$0xff]  }
  0x93   : > { %719 = vrot.lane.b32.xlu0 %v704_v59, %s2551_s1  ;;  %v1569_v59 = vrot.slane %v1567_v28, 1  ;;  %1366 = vmatprep.subr.bf16.mxu1 %v2550_v8  ;;  %v740_v60 = vsel %vm737_vm1, %v738_v40, %v739_v63  ;;  %v3125_v17 = vrot.slane %v2882_v31, 1  ;;  %v745_v15 = vrot.slane %v2895_v48, 1 }
  0x94   : > { %962 = vrot.lane.b32.xlu1 %v947_v3, %s2551_s1  ;;  %2169 = vmatprep.mubr.msk.bf16.mxu1 %vm762_vm2, %v740_v60  ;;  %v1515_v3 = vsel %vm608_vm0, %v2967_v54, %v1514_v39  ;;  %v982_v5 = vsel %vm737_vm1, %v980_v53, %v981_v14  ;;  %v1526_v19 = vrot.slane %v1524_v47, 1  ;;  %v3130_v26 = vsel %vm737_vm1, %v980_v53, %v742_v30 }
  0x95   : > { %1164 = vmatpush1.bf16.msra.mxu0 %v2403_v45  ;;  %v984_v54 = vrot.slane %v2887_v37, 1  ;;  %v1563_v28 = vsel %vm608_vm0, %v3061_v44, %v1562_v25  ;;  %v1570_v36 = vor.u32 %v1569_v59, %v1565_v27  ;;  %2149 = vmatprep.mubr.msk.bf16.mxu0 %vm762_vm2, %v982_v5  ;;  %v987_v39 = vrot.slane %v2899_v52, 1  ;;  %v2408_v25 = vld [vmem:[%s2852_s15 + $0x48] sm:$0xff]  }
  0x96   : > { %1173 = vmatprep.subr.bf16.mxu0 %v2550_v8  ;;  %1367 = vmatpush2.bf16.msra.mxu1 %v2404_v49  ;;  %v3149_v48 = vsel %vm737_vm1, %v3125_v17, %v745_v15  ;;  %v748_v44 = vrot.slane %v2905_v58, 1  ;;  %v989_v27 = vrot.slane %v2922_v7, 1  ;;  %v990_v45 = vrot.slane %v2924_v9, 1 }
  0x97   : > { %1576 = vrot.lane.b32.xlu0 %v1491_v38, %s2551_s1  ;;  %1368 = vmatprep.subr.bf16.mxu1 %v2550_v8  ;;  %v3139_v38 = vrot.slane %v2897_v51, 1  ;;  %v3145_v37 = vsel %vm737_vm1, %v3125_v17, %v984_v54  ;;  %v751_v40 = vrot.slane %v2926_v10, 1  ;;  %v1575_v47 = vsel %vm608_vm0, %v1570_v36, %v1574_v4  ;;  %v2410_v10 = vld [vmem:[%s2852_s15 + $0x40] sm:$0xff]  }
  0x98   : > { %1584 = vrot.lane.b32.xlu1 %v1539_v43, %s2551_s1  ;;  %v1527_v43 = vsel %vm608_vm0, %v2984_v6, %v1526_v19  ;;  %v992_v63 = vrot.slane %v2944_v32, 1  ;;  %v2409_v6 = vld [vmem:[%s2852_s15 + $0xa8] sm:$0xff]   ;;  %v3175_v49 = vsel %vm737_vm1, %v989_v27, %v990_v45  ;;  %v754_v9 = vrot.slane %v2948_v34, 1 }
  0x99   : > { %1174 = vmatpush2.bf16.msra.mxu0 %v2405_v62  ;;  %v3157_v52 = vsel %vm737_vm1, %v3139_v38, %v987_v39  ;;  %v3165_v58 = vsel %vm737_vm1, %v3139_v38, %v748_v44  ;;  %v3178_v53 = vsel %vm737_vm1, %v989_v27, %v751_v40  ;;  %v996_v59 = vrot.slane %v2971_v57, 1 }
  0x9a   : > { %1175 = vmatprep.subr.bf16.mxu0 %v2550_v8  ;;  %1369 = vmatpush2.bf16.msra.mxu1 %v2406_v24  ;;  %v757_v60 = vrot.slane %v2978_v1, 1  ;;  %v3192_v34 = vsel %vm737_vm1, %v992_v63, %v754_v9  ;;  %v998_v14 = vrot.slane %v2991_v20, 1  ;;  %v999_v62 = vrot.slane %v2993_v21, 1  ;;  %v2411_v1 = vld [vmem:[%s2852_s15 + $0xa0] sm:$0xff]  }
  0x9b   : > { %1578 = vrot.lane.b32.xlu0 %v1503_v29, %s2551_s1  ;;  %1370 = vmatprep.subr.bf16.mxu1 %v2550_v8  ;;  %v993_v29 = vrot.slane %v2946_v33, 1  ;;  %v995_v33 = vrot.slane %v2952_v41, 1  ;;  %v760_v57 = vrot.slane %v2995_v22, 1  ;;  %v1001_v5 = vrot.slane %v2997_v23, 1 }
  0x9c   : > { %1586 = vrot.lane.b32.xlu1 %v1551_v56, %s2551_s1  ;;  %v3206_v4 = vsel %vm737_vm1, %v998_v14, %v999_v62  ;;  %v1002_v19 = vrot.slane %v3021_v50, 1  ;;  %v1621_v24 = vrot.slane %v3032_v0, 1  ;;  %v1609_v15 = vrot.slane %v3034_v2, 1 }
  0x9d   : > { %1176 = vmatpush2.bf16.msra.mxu0 %v2407_v42  ;;  %v3185_v56 = vsel %vm737_vm1, %v992_v63, %v993_v29  ;;  %v3198_v30 = vsel %vm737_vm1, %v995_v33, %v996_v59  ;;  %v3211_v21 = vsel %vm737_vm1, %v998_v14, %v760_v57  ;;  %v1624_v0 = vrot.slane %v3039_v11, 1  ;;  %v2415_v29 = vld [vmem:[%s2852_s15 + $0xe0] sm:$0xff]  }
  0x9e   : > { %1177 = vmatprep.subr.bf16.mxu0 %v2550_v8  ;;  %1371 = vmatpush2.bf16.msra.mxu1 %v2408_v25  ;;  %v3217_v22 = vsel %vm737_vm1, %v1001_v5, %v1002_v19  ;;  %v3220_v54 = vsel %vm737_vm1, %v995_v33, %v1621_v24  ;;  %v3226_v50 = vsel %vm737_vm1, %v3125_v17, %v1609_v15  ;;  %v1612_v36 = vrot.slane %v3041_v12, 1 }
  0x9f   : > { %1580 = vrot.lane.b32.xlu0 %v1515_v3, %s2551_s1  ;;  %1372 = vmatprep.subr.bf16.mxu1 %v2550_v8  ;;  %v3201_v3 = vsel %vm737_vm1, %v995_v33, %v757_v60  ;;  %v1627_v42 = vrot.slane %v3044_v16, 1  ;;  %v1615_v17 = vrot.slane %v3065_v46, 1  ;;  %v1629_v11 = vrot.slane %v3071_v55, 1 }
  0xa0   : > { %1588 = vrot.lane.b32.xlu1 %v1563_v28, %s2551_s1  ;;  %v3230_v28 = vsel %vm737_vm1, %v998_v14, %v1624_v0  ;;  %v3235_v39 = vsel %vm737_vm1, %v3139_v38, %v1612_v36  ;;  %v1630_v25 = vrot.slane %v3079_v61, 1  ;;  %v1618_v38 = vrot.slane %v3089_v35, 1  ;;  %v2413_v61 = vld [vmem:[%s2852_s15 + $0xf0] sm:$0xff]  }
  0xa1   : > { %1178 = vmatpush2.bf16.msra.mxu0 %v2409_v6  ;;  %v3239_v2 = vsel %vm737_vm1, %v1001_v5, %v1627_v42  ;;  %v3243_v44 = vsel %vm737_vm1, %v989_v27, %v1615_v17 }
  0xa2   : > { %1179 = vmatprep.subr.bf16.mxu0 %v2550_v8  ;;  %1373 = vmatpush2.bf16.msra.mxu1 %v2410_v10  ;;  %v3248_v12 = vsel %vm737_vm1, %v1629_v11, %v1630_v25  ;;  %v3252_v16 = vsel %vm737_vm1, %v992_v63, %v1618_v38 }
  0xa3   : > { %1582 = vrot.lane.b32.xlu0 %v1527_v43, %s2551_s1  ;;  %2252 = vmatprep.subr.bf16.mxu1 %v2550_v8  ;;  %v2412_v43 = vld [vmem:[%s2852_s15 + $0xf8] sm:$0xff]  }
  0xa4   : > { %1590 = vrot.lane.b32.xlu1 %v1575_v47, %s2551_s1 }
  0xa5   : > { %1180 = vmatpush2.bf16.msra.mxu0 %v2411_v1 }
  0xa6   : > { %1777 = vmatprep.subr.bf16.mxu0 %v2550_v8 }
  0xe9   : > { %v706_v45 = vpop.permute.xlu0 %705 }
  0xea   : > { %v764_v46 = vsel %vm762_vm2, %v2858_v13, %v706_v45  ;;  %v708_v27 = vpop.permute.xlu1 %707 }
  0xeb   : > { %1375 = vmatmul.mubr.bf16.vlgmr.msra.gmra.mxu1 %v764_v46  ;;  %v767_v13 = vsel %vm762_vm2, %v2865_v18, %v708_v27 }
  0xec   : > { %2264 = vmatpush1.bf16.msra.mxu1 %v2412_v43  ;;  %2170 = vmatprep.mubr.msk.bf16.mxu1 %vm762_vm2, %v3130_v26  ;;  %v2414_v26 = vld [vmem:[%s2852_s15 + $0xe8] sm:$0xff]  }
  0xed   : > { %v949_v40 = vpop.permute.xlu0 %948  ;;  %2253 = vmatprep.subr.bf16.mxu1 %v2550_v8 }
  0xee   : > { %v1005_v35 = vsel %vm762_vm2, %v2865_v18, %v949_v40  ;;  %v951_v47 = vpop.permute.xlu1 %950 }
  0xef   : > { %1182 = vmatmul.mubr.bf16.vlgmr.msra.gmra.mxu0 %v1005_v35  ;;  %v1008_v63 = vsel %vm762_vm2, %v2882_v31, %v951_v47 }
  0xf0   : > { %1778 = vmatpush1.bf16.msra.mxu0 %v2412_v43  ;;  %2265 = vmatpush1.bf16.msra.mxu1 %v2413_v61 }
  0xf1   : > { %1779 = vmatprep.subr.bf16.mxu0 %v2550_v8  ;;  %2150 = vmatprep.mubr.msk.bf16.mxu0 %vm762_vm2, %v3145_v37  ;;  %v710_v18 = vpop.permute.xlu0 %709 }
  0xf2   : > { %2254 = vmatprep.subr.bf16.mxu1 %v2550_v8  ;;  %v770_v37 = vsel %vm762_vm2, %v2882_v31, %v710_v18  ;;  %v953_v6 = vpop.permute.xlu1 %952 }
  0xf3   : > { %1383 = vmatmul.mubr.bf16.gmra.mxu1 %v767_v13  ;;  %v1011_v9 = vsel %vm762_vm2, %v2897_v51, %v953_v6 }
  0xf4   : > { %1780 = vmatpush1.bf16.msra.mxu0 %v2413_v61  ;;  %2171 = vmatprep.mubr.msk.bf16.mxu1 %vm762_vm2, %v3149_v48  ;;  %v2416_v48 = vld [vmem:[%s2852_s15 + $0xd8] sm:$0xff]  }
  0xf5   : > { %1781 = vmatprep.subr.bf16.mxu0 %v2550_v8  ;;  %2266 = vmatpush1.bf16.msra.mxu1 %v2414_v26  ;;  %v712_v10 = vpop.permute.xlu0 %711 }
  0xf6   : > { %2255 = vmatprep.subr.bf16.mxu1 %v2550_v8  ;;  %v773_v33 = vsel %vm762_vm2, %v2897_v51, %v712_v10  ;;  %v955_v59 = vpop.permute.xlu1 %954 }
  0xf7   : > { %1190 = vmatmul.mubr.bf16.gmra.mxu0 %v1008_v63  ;;  %v1014_v60 = vsel %vm762_vm2, %v2922_v7, %v955_v59 }
  0xf8   : > { %1782 = vmatpush1.bf16.msra.mxu0 %v2414_v26  ;;  %2151 = vmatprep.mubr.msk.bf16.mxu0 %vm762_vm2, %v3157_v52  ;;  %v2417_v52 = vld [vmem:[%s2852_s15 + $0xd0] sm:$0xff]  }
  0xf9   : > { %1783 = vmatprep.subr.bf16.mxu0 %v2550_v8  ;;  %2267 = vmatpush1.bf16.msra.mxu1 %v2415_v29  ;;  %v714_v14 = vpop.permute.xlu0 %713 }
  0xfa   : > { %2256 = vmatprep.subr.bf16.mxu1 %v2550_v8  ;;  %v776_v62 = vsel %vm762_vm2, %v2922_v7, %v714_v14  ;;  %v957_v57 = vpop.permute.xlu1 %956 }
  0xfb   : > { %1391 = vmatmul.mubr.bf16.gmra.mxu1 %v770_v37  ;;  %v1017_v1 = vsel %vm762_vm2, %v2944_v32, %v957_v57 }
  0xfc   : > { %1784 = vmatpush1.bf16.msra.mxu0 %v2415_v29  ;;  %2172 = vmatprep.mubr.msk.bf16.mxu1 %vm762_vm2, %v3165_v58  ;;  %v2418_v58 = vld [vmem:[%s2852_s15 + $0xc8] sm:$0xff]  }
  0xfd   : > { %1785 = vmatprep.subr.bf16.mxu0 %v2550_v8  ;;  %2268 = vmatpush1.bf16.msra.mxu1 %v2416_v48  ;;  %v716_v5 = vpop.permute.xlu0 %715 }
  0xfe   : > { %2257 = vmatprep.subr.bf16.mxu1 %v2550_v8  ;;  %v779_v19 = vsel %vm762_vm2, %v2944_v32, %v716_v5  ;;  %v959_v24 = vpop.permute.xlu1 %958 }
  0xff   : > { %1198 = vmatmul.mubr.bf16.gmra.mxu0 %v1011_v9  ;;  %v1020_v15 = vsel %vm762_vm2, %v2952_v41, %v959_v24 }
 0x100   : > { %1786 = vmatpush1.bf16.msra.mxu0 %v2416_v48  ;;  %2152 = vmatprep.mubr.msk.bf16.mxu0 %vm762_vm2, %v3175_v49  ;;  %v2419_v49 = vld [vmem:[%s2852_s15 + $0xc0] sm:$0xff]  }
 0x101   : > { %1787 = vmatprep.subr.bf16.mxu0 %v2550_v8  ;;  %2269 = vmatpush1.bf16.msra.mxu1 %v2417_v52  ;;  %v718_v0 = vpop.permute.xlu0 %717 }
 0x102   : > { %2258 = vmatprep.subr.bf16.mxu1 %v2550_v8  ;;  %v782_v36 = vsel %vm762_vm2, %v2952_v41, %v718_v0  ;;  %v961_v42 = vpop.permute.xlu1 %960 }
 0x103   : > { %1399 = vmatmul.mubr.bf16.gmra.mxu1 %v773_v33 }
 0x104   : > { %2173 = vmatprep.mubr.msk.bf16.mxu1 %vm762_vm2, %v3178_v53  ;;  %1788 = vmatpush1.bf16.msra.mxu0 %v2417_v52  ;;  %v2420_v53 = vld [vmem:[%s2852_s15 + $0x118] sm:$0xff]  }
 0x105   : > { %1789 = vmatprep.subr.bf16.mxu0 %v2550_v8  ;;  %2270 = vmatpush1.bf16.msra.mxu1 %v2418_v58  ;;  %v720_v17 = vpop.permute.xlu0 %719 }
 0x106   : > { %2259 = vmatprep.subr.bf16.mxu1 %v2550_v8  ;;  %v963_v11 = vpop.permute.xlu1 %962  ;;  %v785_v25 = vsel %vm762_vm2, %v2991_v20, %v720_v17 }
 0x107   : > { %1206 = vmatmul.mubr.bf16.gmra.mxu0 %v1014_v60 }
 0x108   : > { %2153 = vmatprep.mubr.msk.bf16.mxu0 %vm762_vm2, %v3185_v56  ;;  %1790 = vmatpush1.bf16.msra.mxu0 %v2418_v58  ;;  %v2421_v56 = vld [vmem:[%s2852_s15 + $0x110] sm:$0xff]  }
 0x109   : > { %1791 = vmatprep.subr.bf16.mxu0 %v2550_v8  ;;  %2271 = vmatpush1.bf16.msra.mxu1 %v2419_v49  ;;  %v1577_v38 = vpop.permute.xlu0 %1576 }
 0x10a   : > { %2260 = vmatprep.subr.bf16.mxu1 %v2550_v8 }
 0x10b   : > { %1407 = vmatmul.mubr.bf16.gmra.mxu1 %v776_v62 }
 0x10c   : > { %2174 = vmatprep.mubr.msk.bf16.mxu1 %vm762_vm2, %v3192_v34  ;;  %1792 = vmatpush1.bf16.msra.mxu0 %v2419_v49  ;;  %v2422_v34 = vld [vmem:[%s2852_s15 + $0x108] sm:$0xff]  }
 0x10d   : > { %1801 = vmatprep.subr.bf16.mxu0 %v2550_v8  ;;  %2272 = vmatpush2.bf16.msra.mxu1 %v2420_v53 }
 0x10e   : > { %2261 = vmatprep.subr.bf16.mxu1 %v2550_v8 }
 0x10f   : > { %1214 = vmatmul.mubr.bf16.gmra.mxu0 %v1017_v1 }
 0x110   : > { %2154 = vmatprep.mubr.msk.bf16.mxu0 %vm762_vm2, %v3198_v30  ;;  %1802 = vmatpush2.bf16.msra.mxu0 %v2420_v53  ;;  %v2423_v30 = vld [vmem:[%s2852_s15 + $0x100] sm:$0xff]  }
 0x111   : > { %1803 = vmatprep.subr.bf16.mxu0 %v2550_v8  ;;  %2273 = vmatpush2.bf16.msra.mxu1 %v2421_v56 }
 0x112   : > { %2262 = vmatprep.subr.bf16.mxu1 %v2550_v8 }
 0x113   : > { %1415 = vmatmul.mubr.bf16.gmra.mxu1 %v779_v19 }
 0x114   : > { %2175 = vmatprep.mubr.msk.bf16.mxu1 %vm762_vm2, %v3201_v3  ;;  %1804 = vmatpush2.bf16.msra.mxu0 %v2421_v56  ;;  %v1023_v3 = vsel %vm762_vm2, %v2991_v20, %v961_v42 }
 0x115   : > { %1805 = vmatprep.subr.bf16.mxu0 %v2550_v8  ;;  %2274 = vmatpush2.bf16.msra.mxu1 %v2422_v34 }
 0x116   : > { %2263 = vmatprep.subr.bf16.mxu1 %v2550_v8 }
 0x117   : > { %1222 = vmatmul.mubr.bf16.gmra.mxu0 %v1020_v15 }
 0x118   : > { %2155 = vmatprep.mubr.msk.bf16.mxu0 %vm762_vm2, %v3206_v4  ;;  %1806 = vmatpush2.bf16.msra.mxu0 %v2422_v34  ;;  %v1585_v4 = vpop.permute.xlu1 %1584 }
 0x119   : > { %2275 = vmatpush2.bf16.msra.mxu1 %v2423_v30  ;;  %1807 = vmatprep.subr.bf16.mxu0 %v2550_v8  ;;  %v1026_v8 = vsel %vm762_vm2, %v2997_v23, %v963_v11 }
 0x11b   : > { %1423 = vmatmul.mubr.bf16.gmra.mxu1 %v782_v36 }
 0x11c   : > { %2176 = vmatprep.mubr.msk.bf16.mxu1 %vm762_vm2, %v3211_v21  ;;  %1808 = vmatpush2.bf16.msra.mxu0 %v2423_v30  ;;  %v1645_v21 = vsel %vm762_vm2, %v2952_v41, %v1585_v4  ;;  %v1587_v43 = vpop.permute.xlu1 %1586  ;;  %v1579_v41 = vpop.permute.xlu0 %1578 }
 0x11f   : > { %1230 = vmatmul.mubr.bf16.gmra.mxu0 %v1023_v3 }
 0x120   : > { %2156 = vmatprep.mubr.msk.bf16.mxu0 %vm762_vm2, %v3217_v22  ;;  %v1633_v22 = vsel %vm762_vm2, %v2882_v31, %v1577_v38  ;;  %v1589_v31 = vpop.permute.xlu1 %1588 }
 0x123   : > { %1431 = vmatmul.mubr.bf16.gmra.mxu1 %v785_v25 }
 0x124   : > { %2241 = vmatprep.mubr.msk.bf16.mxu1 %vm762_vm2, %v3220_v54  ;;  %v1648_v54 = vsel %vm762_vm2, %v2991_v20, %v1587_v43  ;;  %v1581_v20 = vpop.permute.xlu0 %1580 }
 0x127   : > { %1238 = vmatmul.mubr.bf16.gmra.mxu0 %v1026_v8 }
 0x128   : > { %2237 = vmatprep.mubr.msk.bf16.mxu0 %vm762_vm2, %v3226_v50  ;;  %v1636_v50 = vsel %vm762_vm2, %v2897_v51, %v1579_v41  ;;  %v1591_v51 = vpop.permute.xlu1 %1590 }
 0x12b   : > { %1842 = vmatmul.mubr.bf16.vlgmr.msra.gmra.mxu1 %v1645_v21 }
 0x12c   : > { %2242 = vmatprep.mubr.msk.bf16.mxu1 %vm762_vm2, %v3230_v28  ;;  %v1651_v28 = vsel %vm762_vm2, %v2997_v23, %v1589_v31  ;;  %v1583_v23 = vpop.permute.xlu0 %1582 }
 0x12f   : > { %1810 = vmatmul.mubr.bf16.vlgmr.msra.gmra.mxu0 %v1633_v22 }
 0x130   : > { %2238 = vmatprep.mubr.msk.bf16.mxu0 %vm762_vm2, %v3235_v39  ;;  %v1639_v39 = vsel %vm762_vm2, %v2922_v7, %v1581_v20 }
 0x133   : > { %1850 = vmatmul.mubr.bf16.gmra.mxu1 %v1648_v54 }
 0x134   : > { %2243 = vmatprep.mubr.msk.bf16.mxu1 %vm762_vm2, %v3239_v2  ;;  %v1654_v2 = vsel %vm762_vm2, %v3071_v55, %v1591_v51 }
 0x137   : > { %1818 = vmatmul.mubr.bf16.gmra.mxu0 %v1636_v50 }
 0x138   : > { %2239 = vmatprep.mubr.msk.bf16.mxu0 %vm762_vm2, %v3243_v44  ;;  %v1642_v44 = vsel %vm762_vm2, %v2944_v32, %v1583_v23 }
 0x13b   : > { %1858 = vmatmul.mubr.bf16.gmra.mxu1 %v1651_v28 }
 0x13c   : > { %2244 = vmatprep.mubr.msk.bf16.mxu1 %vm762_vm2, %v3248_v12 }
 0x13f   : > { %1826 = vmatmul.mubr.bf16.gmra.mxu0 %v1639_v39 }
 0x140   : > { %2240 = vmatprep.mubr.msk.bf16.mxu0 %vm762_vm2, %v3252_v16 }
 0x143   : > { %1866 = vmatmul.mubr.bf16.gmra.mxu1 %v1654_v2 }
 0x147   : > { %1834 = vmatmul.mubr.bf16.gmra.mxu0 %v1642_v44 }
 0x1ab   : > { %v3380_v45 = vpop.f32.mrf.mxu1 }
 0x1ad   : > { %v1378_v7 = vpop.f32.mrf.mxu1 }
 0x1af   : > { %v3382_v46 = vpop.f32.mrf.mxu0  ;;  %v3384_v12 = vpop.f32.mrf.mxu1 }
 0x1b1   : > { %v1185_v27 = vpop.f32.mrf.mxu0  ;;  %v1381_v61 = vpop.f32.mrf.mxu1 }
 0x1b2   : > { %v3434_v27 = vld [vmem:[%s566_s24] ss:$0 sm:$0xff]  ;;  %s2552_s24 = smov [#allocation3]  }
 0x1b3   : > { %v3386_v40 = vpop.f32.mrf.mxu0  ;;  %v3388_v55 = vpop.f32.mrf.mxu1  ;;  %s2428_s6 = sshll.u32 %s2552_s24, 4  ;;  %s2429_s6 = int_to_ptr.vmem [resolvable:$false] %s2428_s6 }
 0x1b4   : > { %s2430_s29 = scalar_lea.vmem %s2429_s6, 4096  ;;  %p2431_p11 = scmp.lt.s32.totalorder %s3504_s19, %s2429_s6 }
 0x1b5   : > { %v1188_v16 = vpop.f32.mrf.mxu0  ;;  %v1386_v35 = vpop.f32.mrf.mxu1  ;;  %p2432_p13 = scmp.lt.s32.totalorder %s2430_s29, %s2424_s11 }
 0x1b7   : > { %v3390_v13 = vpop.f32.mrf.mxu0  ;;  %v3392_v47 = vpop.f32.mrf.mxu1  ;;  %p2433_p0 = por %p2432_p13, %p2431_p11 }
 0x1b9   : > { %v1193_v32 = vpop.f32.mrf.mxu0  ;;  %v1389_v26 = vpop.f32.mrf.mxu1  ;;  %p2434_p1 = pnand %p2433_p0, %p2427_p10 }
 0x1ba   : > { %v1377_v32 = vadd.f32 %v3380_v45, %v3382_v46 }
 0x1bb   : > { %v3394_v63 = vpop.f32.mrf.mxu0  ;;  %v3396_v18 = vpop.f32.mrf.mxu1 }
 0x1bd   : > { %v1196_v29 = vpop.f32.mrf.mxu0  ;;  %v1394_v37 = vpop.f32.mrf.mxu1 }
 0x1bf   : > { %v3398_v6 = vpop.f32.mrf.mxu0  ;;  %v3400_v48 = vpop.f32.mrf.mxu1 }
 0x1c1   : > { %v1201_v9 = vpop.f32.mrf.mxu0  ;;  %v1397_v10 = vpop.f32.mrf.mxu1 }
 0x1c3   : > { %v3402_v52 = vpop.f32.mrf.mxu0  ;;  %v3404_v33 = vpop.f32.mrf.mxu1 }
 0x1c5   : > { %v1204_v59 = vpop.f32.mrf.mxu0  ;;  %v1402_v58 = vpop.f32.mrf.mxu1 }
 0x1c7   : > { %v3406_v60 = vpop.f32.mrf.mxu0  ;;  %v3408_v14 = vpop.f32.mrf.mxu1 }
 0x1c9   : > { %v1209_v49 = vpop.f32.mrf.mxu0  ;;  %v1405_v62 = vpop.f32.mrf.mxu1 }
 0x1cb   : > { %v3410_v57 = vpop.f32.mrf.mxu0  ;;  %v1408_v53 = vpop.f32.mrf.mxu1 }
 0x1cd   : > { %v1212_v1 = vpop.f32.mrf.mxu0  ;;  %v1410_v5 = vpop.f32.mrf.mxu1 }
 0x1cf   : > { %v1215_v56 = vpop.f32.mrf.mxu0  ;;  %v1411_v19 = vpop.f32.mrf.mxu1 }
 0x1d0   : > { %v1409_v23 = vadd.f32 %v1408_v53, %v1215_v56  ;;  %v1380_v53 = vadd.f32 %v3384_v12, %v3386_v40  ;;  %v1385_v12 = vadd.f32 %v3388_v55, %v3390_v13  ;;  %v1388_v55 = vadd.f32 %v3392_v47, %v3394_v63 }
 0x1d1   : > { %v1217_v24 = vpop.f32.mrf.mxu0  ;;  %v1413_v34 = vpop.f32.mrf.mxu1  ;;  %v1393_v47 = vadd.f32 %v3396_v18, %v3398_v6  ;;  %v1396_v6 = vadd.f32 %v3400_v48, %v3402_v52 }
 0x1d3   : > { %v1218_v15 = vpop.f32.mrf.mxu0  ;;  %v1416_v0 = vpop.f32.mrf.mxu1 }
 0x1d4   : > { %v1412_v26 = vadd.f32 %v1411_v19, %v1218_v15 }
 0x1d5   : > { %v1220_v30 = vpop.f32.mrf.mxu0  ;;  %v1418_v36 = vpop.f32.mrf.mxu1 }
 0x1d7   : > { %v1223_v42 = vpop.f32.mrf.mxu0  ;;  %v1419_v3 = vpop.f32.mrf.mxu1 }
 0x1d8   : > { %v1417_v1 = vadd.f32 %v1416_v0, %v1223_v42 }
 0x1d9   : > { %v1225_v17 = vpop.f32.mrf.mxu0  ;;  %v1421_v11 = vpop.f32.mrf.mxu1 }
 0x1db   : > { %v1226_v25 = vpop.f32.mrf.mxu0  ;;  %v3412_v8 = vpop.f32.mrf.mxu1 }
 0x1dc   : > { %v1420_v40 = vadd.f32 %v1419_v3, %v1226_v25 }
 0x1dd   : > { %v1228_v4 = vpop.f32.mrf.mxu0  ;;  %v1426_v21 = vpop.f32.mrf.mxu1 }
 0x1df   : > { %v3414_v38 = vpop.f32.mrf.mxu0  ;;  %v3416_v22 = vpop.f32.mrf.mxu1 }
 0x1e0   : > { %v1425_v13 = vadd.f32 %v3412_v8, %v3414_v38 }
 0x1e1   : > { %v1233_v43 = vpop.f32.mrf.mxu0  ;;  %v1429_v54 = vpop.f32.mrf.mxu1 }
 0x1e3   : > { %v3419_v41 = vpop.f32.mrf.mxu0  ;;  %v3421_v50 = vpop.f32.mrf.mxu1 }
 0x1e4   : > { %v1428_v63 = vadd.f32 %v3416_v22, %v3419_v41 }
 0x1e5   : > { %v1236_v31 = vpop.f32.mrf.mxu0  ;;  %v1434_v28 = vpop.f32.mrf.mxu1 }
 0x1e7   : > { %v3424_v20 = vpop.f32.mrf.mxu0  ;;  %v3426_v39 = vpop.f32.mrf.mxu1 }
 0x1e8   : > { %v1433_v22 = vadd.f32 %v3421_v50, %v3424_v20  ;;  %v1401_v50 = vadd.f32 %v3404_v33, %v3406_v60 }
 0x1e9   : > { %v1241_v51 = vpop.f32.mrf.mxu0  ;;  %v1437_v2 = vpop.f32.mrf.mxu1 }
 0x1eb   : > { %v3432_v44 = vpop.f32.mrf.mxu0  ;;  %v1843_v7 = vpop.f32.mrf.mxu1 }
 0x1ec   : > { %v1882_v61 = vadd.f32 %v1843_v7, %v1409_v23  ;;  %v1436_v20 = vadd.f32 %v3426_v39, %v3432_v44  ;;  %v1404_v39 = vadd.f32 %v3408_v14, %v3410_v57 }
 0x1ed   : > { %v1244_v16 = vpop.f32.mrf.mxu0  ;;  %v1845_v35 = vpop.f32.mrf.mxu1 }
 0x1ee   : > { %v1905_v29 = vadd.f32 %v3434_v27, %v1882_v61 }
 0x1ef   : > { %v1811_v37 = vpop.f32.mrf.mxu0  ;;  %v1846_v9 = vpop.f32.mrf.mxu1 }
 0x1f0   : > { %v1921_v10 = vmax.f32 %v1905_v29, 0.0  ;;  %v1874_v59 = vadd.f32 %v1811_v37, %v1377_v32  ;;  %v1883_v58 = vadd.f32 %v1846_v9, %v1412_v26 }
 0x1f1   : > { %v1813_v49 = vpop.f32.mrf.mxu0  ;;  %v1848_v62 = vpop.f32.mrf.mxu1 }
 0x1f2   : > { %1937 = vst [vmem:[%s3443_s8 + $0x40] sm:$0xff] %v1921_v10  ;;  %v1897_v45 = vadd.f32 %v3434_v27, %v1874_v59  ;;  %v1906_v46 = vadd.f32 %v3434_v27, %v1883_v58 }
 0x1f3   : > { %v1814_v5 = vpop.f32.mrf.mxu0  ;;  %v1851_v56 = vpop.f32.mrf.mxu1 }
 0x1f4   : > { %v1913_v19 = vmax.f32 %v1897_v45, 0.0  ;;  %v1922_v24 = vmax.f32 %v1906_v46, 0.0  ;;  %v1875_v34 = vadd.f32 %v1814_v5, %v1380_v53  ;;  %v1884_v15 = vadd.f32 %v1851_v56, %v1417_v1 }
 0x1f5   : > { %v1816_v30 = vpop.f32.mrf.mxu0  ;;  %v1853_v36 = vpop.f32.mrf.mxu1 }
 0x1f6   : > { %1929 = vst [vmem:[%s3443_s8] sm:$0xff] %v1913_v19  ;;  %1938 = vst [vmem:[%s3443_s8 + $0x48] sm:$0xff] %v1922_v24  ;;  %v1898_v0 = vadd.f32 %v3434_v27, %v1875_v34  ;;  %v1907_v42 = vadd.f32 %v3434_v27, %v1884_v15 }
 0x1f7   : > { %v1819_v17 = vpop.f32.mrf.mxu0  ;;  %v1854_v11 = vpop.f32.mrf.mxu1 }
 0x1f8   : > { %v1914_v4 = vmax.f32 %v1898_v0, 0.0  ;;  %v1923_v21 = vmax.f32 %v1907_v42, 0.0  ;;  %v1876_v43 = vadd.f32 %v1819_v17, %v1385_v12  ;;  %v1885_v54 = vadd.f32 %v1854_v11, %v1420_v40 }
 0x1f9   : > { %v1821_v31 = vpop.f32.mrf.mxu0  ;;  %v1856_v28 = vpop.f32.mrf.mxu1 }
 0x1fa   : > { %1930 = vst [vmem:[%s3443_s8 + $0x8] sm:$0xff] %v1914_v4  ;;  %1939 = vst [vmem:[%s3443_s8 + $0x50] sm:$0xff] %v1923_v21  ;;  %v1899_v3 = vadd.f32 %v3434_v27, %v1876_v43  ;;  %v1908_v25 = vadd.f32 %v3434_v27, %v1885_v54 }
 0x1fb   : > { %v1822_v51 = vpop.f32.mrf.mxu0  ;;  %v1859_v2 = vpop.f32.mrf.mxu1 }
 0x1fc   : > { %v1915_v23 = vmax.f32 %v1899_v3, 0.0  ;;  %v1924_v7 = vmax.f32 %v1908_v25, 0.0  ;;  %v1877_v61 = vadd.f32 %v1822_v51, %v1388_v55  ;;  %v1886_v16 = vadd.f32 %v1859_v2, %v1425_v13 }
 0x1fd   : > { %v1824_v35 = vpop.f32.mrf.mxu0  ;;  %v1861_v32 = vpop.f32.mrf.mxu1 }
 0x1fe   : > { %1931 = vst [vmem:[%s3443_s8 + $0x10] sm:$0xff] %v1915_v23  ;;  %1940 = vst [vmem:[%s3443_s8 + $0x58] sm:$0xff] %v1924_v7  ;;  %v1900_v8 = vadd.f32 %v3434_v27, %v1877_v61  ;;  %v1909_v38 = vadd.f32 %v3434_v27, %v1886_v16 }
 0x1ff   : > { %v1827_v26 = vpop.f32.mrf.mxu0  ;;  %v1862_v29 = vpop.f32.mrf.mxu1 }
 0x200   : > { %v1916_v37 = vmax.f32 %v1900_v8, 0.0  ;;  %v1925_v9 = vmax.f32 %v1909_v38, 0.0  ;;  %v1878_v10 = vadd.f32 %v1827_v26, %v1393_v47  ;;  %v1887_v59 = vadd.f32 %v1862_v29, %v1428_v63 }
 0x201   : > { %v1829_v58 = vpop.f32.mrf.mxu0  ;;  %v1864_v18 = vpop.f32.mrf.mxu1 }
 0x202   : > { %1932 = vst [vmem:[%s3443_s8 + $0x18] sm:$0xff] %v1916_v37  ;;  %1941 = vst [vmem:[%s3443_s8 + $0x60] sm:$0xff] %v1925_v9  ;;  %v1901_v41 = vadd.f32 %v3434_v27, %v1878_v10  ;;  %v1910_v49 = vadd.f32 %v3434_v27, %v1887_v59 }
 0x203   : > { %v1830_v62 = vpop.f32.mrf.mxu0  ;;  %v1867_v53 = vpop.f32.mrf.mxu1 }
 0x204   : > { %v1917_v1 = vmax.f32 %v1901_v41, 0.0  ;;  %v1926_v45 = vmax.f32 %v1910_v49, 0.0  ;;  %v1879_v46 = vadd.f32 %v1830_v62, %v1396_v6  ;;  %v1888_v5 = vadd.f32 %v1867_v53, %v1433_v22 }
 0x205   : > { %v1832_v48 = vpop.f32.mrf.mxu0  ;;  %v1869_v52 = vpop.f32.mrf.mxu1 }
 0x206   : > { %1933 = vst [vmem:[%s3443_s8 + $0x20] sm:$0xff] %v1917_v1  ;;  %1942 = vst [vmem:[%s3443_s8 + $0x68] sm:$0xff] %v1926_v45  ;;  %v1902_v56 = vadd.f32 %v3434_v27, %v1879_v46  ;;  %v1911_v19 = vadd.f32 %v3434_v27, %v1888_v5 }
 0x207   : > { %v1835_v24 = vpop.f32.mrf.mxu0  ;;  %v1870_v34 = vpop.f32.mrf.mxu1 }
 0x208   : > { %v1918_v15 = vmax.f32 %v1902_v56, 0.0  ;;  %v1927_v30 = vmax.f32 %v1911_v19, 0.0  ;;  %v1880_v36 = vadd.f32 %v1835_v24, %v1401_v50  ;;  %v1889_v12 = vadd.f32 %v1870_v34, %v1436_v20 }
 0x209   : > { %v1837_v33 = vpop.f32.mrf.mxu0  ;;  %v1872_v60 = vpop.f32.mrf.mxu1 }
 0x20a   : > { %1934 = vst [vmem:[%s3443_s8 + $0x28] sm:$0xff] %v1918_v15  ;;  %1943 = vst [vmem:[%s3443_s8 + $0x70] sm:$0xff] %v1927_v30  ;;  %v1903_v44 = vadd.f32 %v3434_v27, %v1880_v36  ;;  %v1912_v40 = vadd.f32 %v3434_v27, %v1889_v12 }
 0x20b   : > { %v1838_v0 = vpop.f32.mrf.mxu0 }
 0x20c   : > { %v1919_v42 = vmax.f32 %v1903_v44, 0.0  ;;  %v1928_v17 = vmax.f32 %v1912_v40, 0.0  ;;  %v1881_v11 = vadd.f32 %v1838_v0, %v1404_v39 }
 0x20d   : > { %v1840_v4 = vpop.f32.mrf.mxu0 }
 0x20e   : > { %1935 = vst [vmem:[%s3443_s8 + $0x30] sm:$0xff] %v1919_v42  ;;  %1944 = vst [vmem:[%s3443_s8 + $0x78] sm:$0xff] %v1928_v17  ;;  %v1904_v14 = vadd.f32 %v3434_v27, %v1881_v11 }
 0x210   : > { %v1920_v57 = vmax.f32 %v1904_v14, 0.0 }
 0x212   : > { %1936 = vst [vmem:[%s3443_s8 + $0x38] sm:$0xff] %v1920_v57 }
 0x213   : > { %2437 = shalt.err (!%p2434_p1)
}
 0x214   : > { %s2438_s25 = scalar_lea.hbm %s3502_s28, 2048  ;;  %s2442_s4 = scalar_lea.hbm %s3575_s3, 16384 }
 0x215   : > { %p2439_p2 = scmp.ne.s32.totalorder %s3502_s28, %s2438_s25  ;;  %p2443_p5 = scmp.lt.s32.totalorder %s3502_s28, %s3575_s3 }
 0x216   : > { %p2444_p6 = scmp.lt.s32.totalorder %s2442_s4, %s2438_s25 }
 0x217   : > { %p2440_p3 = pnand %p2439_p2, %p2666_p9 }
 0x218   : > { %p2445_p7 = por %p2444_p6, %p2443_p5 }
 0x219   : > { %p2441_p4 = pneg %p2440_p3 }
 0x21b   : > { %p2446_p8 = pnand %p2445_p7, %p2441_p4 }
 0x21d   : > { %2449 = shalt.err (!%p2446_p8)
}
 0x21e   : > { %s2553_s15 = smov 128   ;;  %s2554_s1 = smov 256  }
 0x21f   : > { %s2555_s11 = smov 8  }
 0x220   : > { %2280 = dma.vmem_to_hbm [thread:$0]  (%p2666_p9), %s3504_s19, 2048, %s3502_s28, %s3509_s10, %s2553_s15, %s2554_s1, %s2555_s11  }
 0x221 PF: > { %p2286_p10 = scmp.ge.s32.totalorder %s2548_s23, 2  ;;  %s1977_s24 = sand.u32 1, %s2504_s12  }
 0x222   : > { %s1978_s6 = scalar_lea.sflag [#allocation4], %s1977_s24 }
 0x223   : > { %p2283_p11 = pnand %p2286_p10, %p2675_p12 }
 0x225   : > { %p2284_p13 = pneg %p2283_p11 }
 0x227   : > { %2499 = dma.done.wait (%p2284_p13), %s1978_s6, 2048  }
 0x228   : > { %2501 = vsyncadd (%p2284_p13), %s1978_s6, 4294965248  ;;  %s16_s23 = sadd.s32 1, %s2548_s23   ;;  %s3585_s7 = sld [smem:[#allocation6_spill]] }
 0x229   : > { %p13_p0 = scmp.ge.s32.totalorder %s16_s23, 10   ;;  %s3586_s28 = sld [smem:[#allocation7_spill]] }
 0x22a   : > { %s3587_s12 = smov %s2508_s13  ;;  %s3588_s13 = smov %s2512_s14 }
 0x22b   : > { %s3589_s14 = smov %s2680_s27  ;;  %s3590_s15 = smov %s2520_s16 }
 0x22c   : > { %s3591_s16 = smov %s2658_s5  ;;  %s3592_s17 = smov %s2536_s20 }
 0x22d   : > { %s3593_s18 = smov %s2540_s21  ;;  %s3594_s19 = smov %s2544_s22 }
 0x22e   : > { %s3595_s20 = smov %s3599_s26  ;;  %s3596_s21 = smov %s3585_s7 }
 0x22f   : > { %s3597_s22 = smov %s3586_s28  ;;  %15 = sbr.rel (!%p13_p0) target bundleno = 9 (0x9), region = 123 }
 0x234   :  { %1983 = vsyncpa [#allocation4], 1 }
 0x235   :  { %1985 = vsyncpa [#allocation4 + $0x1], 1 }

</bundles_post_ra>
